<compile_context>
chip_gen: v7x
topology: tpu7x:2x2x1
jax: 0.10.0
libtpu: 0.0.40
codegen_flags: <defaults>
</compile_context>

<pallas_src>
import functools

import jax
import jax.numpy as jnp
from jax.experimental import pallas as pl
from jax.experimental.pallas import tpu as pltpu

EPS = 1e-5
LANE = 128                    # TPU lane width; channel dims padded to this
MM_DTYPE = jnp.bfloat16       # matmul operand / activation storage dtype


# --------------------------------------------------------------------------
# hardware-aware budgets
# --------------------------------------------------------------------------
def _vmem_capacity_bytes():
    try:
        return int(pltpu.get_tpu_info().vmem_capacity_bytes)
    except Exception:                     # pragma: no cover - defensive default
        return 64 << 20                   # conservative (v7x per-core VMEM)


_VMEM_CAP = _vmem_capacity_bytes()
# Scoped-VMEM limit for every pallas_call (defaults are only 16/32 MiB).
_VMEM_LIMIT = int(min(100 << 20, (_VMEM_CAP * 3) // 4))
# Per-row-of-tile byte budget: generous on 128 MiB chips (v5e/v6e), tight on v7x.
_TILE_BUDGET = (8 << 20) if _VMEM_CAP >= (96 << 20) else (4 << 20)


def _compiler_params(sem):
    return pltpu.CompilerParams(dimension_semantics=sem,
                                vmem_limit_bytes=_VMEM_LIMIT)


# --------------------------------------------------------------------------
# small helpers
# --------------------------------------------------------------------------
def _round_up(x, m):
    return (x + m - 1) // m * m


def _pad_last(a, target):
    pad = target - a.shape[-1]
    if pad == 0:
        return a
    return jnp.pad(a, [(0, 0)] * (a.ndim - 1) + [(0, pad)])


def _pick_tm(m, bytes_per_row):
    """Largest power-of-two row tile within the VMEM tile budget that still
    leaves >= 2 grid steps (keeps both v7x TensorCores busy)."""
    cap = max(8, _TILE_BUDGET // max(bytes_per_row, 1))
    for t in (1024, 512, 256, 128, 64, 32, 16, 8):
        if t <= cap and 2 * t <= m:
            return t
    return 8


def _bn_scale_shift(stats, count, gamma, beta, eps=EPS):
    """Per-channel scale/shift from accumulated (sum, sum-of-squares)."""
    mean = stats[0] / count
    var = jnp.maximum(stats[1] / count - mean * mean, 0.0)   # clamp cancellation
    scale = gamma * jax.lax.rsqrt(var + eps)
    return scale, beta - mean * scale


def _im2col_3x3_padded(xp, stride):
    """(N,H+2,W+2,C) already zero-padded -> (N,Ho,Wo,9*C) patches.
    Only used by the stride>1 fallback path (bf16)."""
    n, hp2, wp2, c = xp.shape
    h, w = hp2 - 2, wp2 - 2
    ho = (h - 1) // stride + 1
    wo = (w - 1) // stride + 1
    taps = []
    for ky in range(3):
        for kx in range(3):
            taps.append(xp[:, ky:ky + stride * (ho - 1) + 1:stride,
                           kx:kx + stride * (wo - 1) + 1:stride, :])
    return jnp.concatenate(taps, axis=-1), ho, wo


# --------------------------------------------------------------------------
# Pallas kernels
# --------------------------------------------------------------------------
def _row_mask(tm, m_valid):
    rows = pl.program_id(0) * tm + jax.lax.broadcasted_iota(jnp.int32, (tm, 1), 0)
    return rows < m_valid


def _emit_mm_stats(x_bf16, w_ref, y_ref, stats_ref, row_mask):
    """y = x @ w (bf16 operands, f32 accumulation) + per-tile BN partial stats.
    Ragged last tiles mask their OOB rows out of the stats (their y writes are
    dropped by the pipeline anyway)."""
    y = jnp.dot(x_bf16, w_ref[...], preferred_element_type=jnp.float32)
    ys = y if row_mask is None else jnp.where(row_mask, y, 0.0)
    s1 = jnp.sum(ys, axis=0, keepdims=True)        # (1, Cout) partial sum
    s2 = jnp.sum(ys * ys, axis=0, keepdims=True)   # (1, Cout) partial sum-sq
    stats_ref[...] = jnp.concatenate([s1, s2], axis=0).reshape(stats_ref.shape)
    y_ref[...] = y.astype(y_ref.dtype)


def mm_stats_kernel(x_ref, w_ref, y_ref, stats_ref, *, m_valid, tm, ragged):
    mask = _row_mask(tm, m_valid) if ragged else None
    _emit_mm_stats(x_ref[...], w_ref, y_ref, stats_ref, mask)


def bn_relu_mm_stats_kernel(x_ref, scale_ref, shift_ref, w_ref, y_ref, stats_ref,
                            *, m_valid, tm, ragged):
    # fused prologue: previous layer's BN apply (precomputed scale/shift) + ReLU
    h = jnp.maximum(x_ref[...].astype(jnp.float32) * scale_ref[...]
                    + shift_ref[...], 0.0)
    mask = _row_mask(tm, m_valid) if ragged else None
    _emit_mm_stats(h.astype(MM_DTYPE), w_ref, y_ref, stats_ref, mask)


def conv2_fused_kernel(hp_ref, w_ref, y_ref, stats_ref, *, ho, wo):
    """3x3 stride-1 conv over one whole (zero-padded, BN1+ReLU'd) image held in
    VMEM: 9 shifted-slice accumulating matmuls + BN2 partial stats."""
    c = w_ref.shape[-1]
    acc = jnp.zeros((ho * wo, c), jnp.float32)
    for t in range(9):
        ky, kx = divmod(t, 3)
        tap = hp_ref[0, ky:ky + ho, kx:kx + wo, :].reshape(ho * wo, c)
        acc = acc + jnp.dot(tap, w_ref[t], preferred_element_type=jnp.float32)
    s1 = jnp.sum(acc, axis=0, keepdims=True)
    s2 = jnp.sum(acc * acc, axis=0, keepdims=True)
    stats_ref[...] = jnp.concatenate([s1, s2], axis=0).reshape(stats_ref.shape)
    y_ref[...] = acc.reshape(1, ho, wo, c).astype(y_ref.dtype)


def bn_add_relu_kernel(y_ref, scale_ref, shift_ref, r_ref, rscale_ref, rshift_ref,
                       o_ref):
    # fused epilogue: BN3 apply + BN'd conv-shortcut add + final ReLU
    y = y_ref[...].astype(jnp.float32) * scale_ref[...] + shift_ref[...]
    r = r_ref[...].astype(jnp.float32) * rscale_ref[...] + rshift_ref[...]
    o_ref[...] = jnp.maximum(y + r, 0.0).astype(o_ref.dtype)


def bn_add_relu_identity_kernel(y_ref, scale_ref, shift_ref, x_ref, o_ref):
    # fused epilogue: BN3 apply + identity shortcut (native channel width,
    # no scale/shift) + final ReLU.  Padded output lanes see +0.
    y = y_ref[...].astype(jnp.float32) * scale_ref[...] + shift_ref[...]
    r = x_ref[...].astype(jnp.float32)
    cpad = y.shape[-1] - r.shape[-1]
    if cpad:
        r = jnp.concatenate(
            [r, jnp.zeros((r.shape[0], cpad), jnp.float32)], axis=-1)
    o_ref[...] = jnp.maximum(y + r, 0.0).astype(o_ref.dtype)


# --------------------------------------------------------------------------
# pallas_call wrappers
# --------------------------------------------------------------------------
def matmul_stats(x2d, w, scale=None, shift=None):
    """Row-tiled bf16 matmul (+ optional fused BN+ReLU prologue) producing a
    bf16 conv output and per-tile (sum, sumsq) BN partials (reduced in glue)."""
    m, k = x2d.shape
    cout = w.shape[1]
    tm = _pick_tm(m, 4 * (k + cout))
    nt = pl.cdiv(m, tm)
    ragged = (m % tm) != 0

    x_spec = pl.BlockSpec((tm, k), lambda i: (i, 0))
    w_spec = pl.BlockSpec((k, cout), lambda i: (0, 0))
    vec_spec = pl.BlockSpec((1, k), lambda i: (0, 0))
    y_spec = pl.BlockSpec((tm, cout), lambda i: (i, 0))
    st_spec = pl.BlockSpec((1, 2, cout), lambda i: (i, 0, 0))

    if scale is None:
        kernel = functools.partial(mm_stats_kernel, m_valid=m, tm=tm, ragged=ragged)
        in_specs, args = [x_spec, w_spec], (x2d, w)
    else:
        kernel = functools.partial(bn_relu_mm_stats_kernel,
                                   m_valid=m, tm=tm, ragged=ragged)
        in_specs = [x_spec, vec_spec, vec_spec, w_spec]
        args = (x2d, scale.reshape(1, k).astype(jnp.float32),
                shift.reshape(1, k).astype(jnp.float32), w)

    y, stats = pl.pallas_call(
        kernel,
        out_shape=(jax.ShapeDtypeStruct((m, cout), MM_DTYPE),
                   jax.ShapeDtypeStruct((nt, 2, cout), jnp.float32)),
        grid=(nt,),
        in_specs=in_specs,
        out_specs=(y_spec, st_spec),
        compiler_params=_compiler_params(("parallel",)),
    )(*args)
    return y, jnp.sum(stats, axis=0)              # (2, cout) total sum / sumsq


def conv3x3_fused(h1p, w_taps):
    """Stride-1 3x3 conv; one zero-padded image per grid step resides in VMEM,
    so no im2col patches ever touch HBM."""
    n, hp2, wp2, c = h1p.shape
    ho, wo = hp2 - 2, wp2 - 2
    kernel = functools.partial(conv2_fused_kernel, ho=ho, wo=wo)
    y, stats = pl.pallas_call(
        kernel,
        out_shape=(jax.ShapeDtypeStruct((n, ho, wo, c), MM_DTYPE),
                   jax.ShapeDtypeStruct((n, 2, c), jnp.float32)),
        grid=(n,),
        in_specs=[pl.BlockSpec((1, hp2, wp2, c), lambda b: (b, 0, 0, 0)),
                  pl.BlockSpec((9, c, c), lambda b: (0, 0, 0))],
        out_specs=(pl.BlockSpec((1, ho, wo, c), lambda b: (b, 0, 0, 0)),
                   pl.BlockSpec((1, 2, c), lambda b: (b, 0, 0))),
        compiler_params=_compiler_params(("parallel",)),
    )(h1p, w_taps)
    return y, jnp.sum(stats, axis=0), ho, wo


def bn_add_relu(y2d, scale, shift, res2d, rscale, rshift):
    m, c = y2d.shape
    tm = _pick_tm(m, 16 * c)
    nt = pl.cdiv(m, tm)
    row = pl.BlockSpec((tm, c), lambda i: (i, 0))
    vec = pl.BlockSpec((1, c), lambda i: (0, 0))
    return pl.pallas_call(
        bn_add_relu_kernel,
        out_shape=jax.ShapeDtypeStruct((m, c), jnp.float32),
        grid=(nt,),
        in_specs=[row, vec, vec, row, vec, vec],
        out_specs=row,
        compiler_params=_compiler_params(("parallel",)),
    )(y2d, scale.reshape(1, c), shift.reshape(1, c),
      res2d, rscale.reshape(1, c), rshift.reshape(1, c))


def bn_add_relu_identity(y2d, scale, shift, x2d):
    m, c = y2d.shape
    cin = x2d.shape[1]
    tm = _pick_tm(m, 16 * c)
    nt = pl.cdiv(m, tm)
    row_y = pl.BlockSpec((tm, c), lambda i: (i, 0))
    row_x = pl.BlockSpec((tm, cin), lambda i: (i, 0))
    vec = pl.BlockSpec((1, c), lambda i: (0, 0))
    return pl.pallas_call(
        bn_add_relu_identity_kernel,
        out_shape=jax.ShapeDtypeStruct((m, c), jnp.float32),
        grid=(nt,),
        in_specs=[row_y, vec, vec, row_x],
        out_specs=row_y,
        compiler_params=_compiler_params(("parallel",)),
    )(y2d, scale.reshape(1, c), shift.reshape(1, c), x2d)


# --------------------------------------------------------------------------
# Residual block (plain-JAX glue around the Pallas kernels)
# --------------------------------------------------------------------------
class ResidualBlockPallas:
    def __init__(self, in_channel, out_channel, stride=1, same_shape=True, key=None):
        assert out_channel % 4 == 0
        if same_shape:
            assert stride == 1 and in_channel == out_channel, \
                "identity shortcut needs stride=1 and in_channel==out_channel"
        mid = out_channel // 4
        self.in_channel, self.out_channel = in_channel, out_channel
        self.mid = mid
        self.midp = _round_up(mid, LANE)          # lane-dense intermediate channels
        self.coutp = _round_up(out_channel, LANE)
        self.stride = stride
        self.same_shape = same_shape
        if key is None:
            key = jax.random.PRNGKey(0)
        ks = jax.random.split(key, 4)

        def conv_init(k, shape, fan_in):
            return jax.random.normal(k, shape, jnp.float32) / jnp.sqrt(jnp.float32(fan_in))

        midp, coutp = self.midp, self.coutp
        # 1x1 convs stored as (Cin, Cout); the 3x3 as (9, Cin_p, Cout_p) taps.
        # Padded channels carry exact zeros end-to-end and are sliced off.
        w1 = conv_init(ks[0], (in_channel, mid), in_channel)
        w2 = conv_init(ks[1], (3, 3, mid, mid), 9 * mid)
        w3 = conv_init(ks[2], (mid, out_channel), mid)
        self.w1 = _pad_last(w1, midp).astype(MM_DTYPE)
        w2p = jnp.pad(w2, ((0, 0), (0, 0), (0, midp - mid), (0, midp - mid)))
        self.w2 = w2p.reshape(9, midp, midp).astype(MM_DTYPE)   # tap-major
        self.w3 = jnp.pad(w3, ((0, midp - mid),
                               (0, coutp - out_channel))).astype(MM_DTYPE)

        self.g1 = _pad_last(jnp.ones((mid,), jnp.float32), midp)
        self.b1 = jnp.zeros((midp,), jnp.float32)
        self.g2 = _pad_last(jnp.ones((mid,), jnp.float32), midp)
        self.b2 = jnp.zeros((midp,), jnp.float32)
        self.g3 = _pad_last(jnp.ones((out_channel,), jnp.float32), coutp)
        self.b3 = jnp.zeros((coutp,), jnp.float32)
        if not same_shape:
            wd = conv_init(ks[3], (in_channel, out_channel), in_channel)
            self.wd = _pad_last(wd, coutp).astype(MM_DTYPE)
            self.gd = _pad_last(jnp.ones((out_channel,), jnp.float32), coutp)
            self.bd = jnp.zeros((coutp,), jnp.float32)

    def __call__(self, x_nchw):
        # NCHW in -> channels-last internally -> NCHW out
        x = jnp.transpose(x_nchw, (0, 2, 3, 1)).astype(jnp.float32)
        n, h, w, cin = x.shape
        s = self.stride
        m1 = n * h * w
        x2d = x.reshape(m1, cin).astype(MM_DTYPE)     # bf16 operand stream

        # conv1 (1x1) + partial BN1 stats
        y1, st1 = matmul_stats(x2d, self.w1)
        sc1, sh1 = _bn_scale_shift(st1, m1, self.g1, self.b1)

        # BN1 apply + ReLU + zero halo pad (one fused XLA pass, bf16 out).
        # Padding must see post-BN zeros, so this cannot be fused into conv2.
        h1 = jnp.maximum(y1.astype(jnp.float32) * sc1 + sh1, 0.0)
        h1p = jnp.pad(h1.astype(MM_DTYPE).reshape(n, h, w, self.midp),
                      ((0, 0), (1, 1), (1, 1), (0, 0)))

        # conv2 (3x3, stride s) + partial BN2 stats
        if s == 1:
            y2, st2, ho, wo = conv3x3_fused(h1p, self.w2)       # no HBM im2col
            m2 = n * ho * wo
            y2_2d = y2.reshape(m2, self.midp)
        else:
            # TODO(synk): stride>1 still im2col's in glue (bf16); an in-kernel
            # strided halo gather would remove this last 9x HBM stream too.
            patches, ho, wo = _im2col_3x3_padded(h1p, s)
            m2 = n * ho * wo
            y2_2d, st2 = matmul_stats(patches.reshape(m2, 9 * self.midp),
                                      self.w2.reshape(9 * self.midp, self.midp))
        sc2, sh2 = _bn_scale_shift(st2, m2, self.g2, self.b2)

        # conv3 (1x1) with fused BN2+ReLU prologue, + partial BN3 stats
        y3, st3 = matmul_stats(y2_2d, self.w3, sc2, sh2)
        sc3, sh3 = _bn_scale_shift(st3, m2, self.g3, self.b3)

        # shortcut + fused epilogue: BN3 + add + final ReLU
        if self.same_shape:
            out = bn_add_relu_identity(y3, sc3, sh3, x2d)       # native-width residual
        else:
            xs = x[:, ::s, ::s, :].reshape(m2, cin).astype(MM_DTYPE)
            res, std = matmul_stats(xs, self.wd)
            rsc, rsh = _bn_scale_shift(std, m2, self.gd, self.bd)
            out = bn_add_relu(y3, sc3, sh3, res, rsc, rsh)

        out = out.reshape(n, ho, wo, self.coutp)[..., :self.out_channel]
        # TODO(synk): this NCHW transpose is a full extra HBM round trip; drop
        # it if the downstream consumer accepts NHWC.
        return jnp.transpose(out, (0, 3, 1, 2))


if __name__ == "__main__":
    key = jax.random.PRNGKey(0)
    kx, kp1, kp2 = jax.random.split(key, 3)
    x = jax.random.normal(kx, (2, 32, 8, 8), jnp.float32)   # NCHW, like PyTorch

    # same_shape=True path (identity shortcut, stride 1, fused 3x3 conv)
    blk_same = ResidualBlockPallas(32, 32, stride=1, same_shape=True, key=kp1)
    y_same = jax.jit(blk_same.__call__)(x)
    assert y_same.shape == (2, 32, 8, 8), y_same.shape

    # same_shape=False path (decSample shortcut, stride 2, im2col fallback)
    blk_down = ResidualBlockPallas(32, 64, stride=2, same_shape=False, key=kp2)
    y_down = jax.jit(blk_down.__call__)(x)
    assert y_down.shape == (2, 64, 4, 4), y_down.shape

    jax.block_until_ready((y_same, y_down))
    print("KERNEL_OK")
</pallas_src>

<mosaic_0001>
module attributes {stable_mosaic.version = 11 : i64} {
  func.func @mm_stats_kernel(%arg0: i32, %arg1: memref<64x32xbf16, #tpu.memory_space<vmem>>, %arg2: memref<32x128xbf16, #tpu.memory_space<vmem>>, %arg3: memref<64x128xbf16, #tpu.memory_space<vmem>>, %arg4: memref<1x2x128xf32, #tpu.memory_space<vmem>>) attributes {dimension_semantics = [#tpu.dimension_semantics<parallel>], iteration_bounds = array<i64: 2>, scalar_prefetch = 0 : i64, scratch_operands = 0 : i64, tpu.core_type = #tpu.core_type<tc>, window_params = [{transform_indices = @transform_0, window_bounds = array<i64: 64, 32>}, {pipeline_mode = #tpu.pipeline_mode<synchronous>, transform_indices = @transform_1, window_bounds = array<i64: 32, 128>}, {transform_indices = @transform_2, window_bounds = array<i64: 64, 128>}, {transform_indices = @transform_3, window_bounds = array<i64: 1, 2, 128>}]} {
    %c0 = arith.constant 0 : index
    %c0_0 = arith.constant 0 : index
    %0 = vector.load %arg1[%c0, %c0_0] : memref<64x32xbf16, #tpu.memory_space<vmem>>, vector<64x32xbf16>
    %c0_1 = arith.constant 0 : index
    %c0_2 = arith.constant 0 : index
    %1 = vector.load %arg2[%c0_1, %c0_2] : memref<32x128xbf16, #tpu.memory_space<vmem>>, vector<32x128xbf16>
    %cst = arith.constant dense<0.000000e+00> : vector<64x128xf32>
    %2 = tpu.matmul %0, %1, %cst {dimension_numbers = #tpu.dot_dimension_numbers<[1], [0], [0], [1], [0, 0, 1, 1], [], []>} : vector<64x32xbf16>, vector<32x128xbf16>, vector<64x128xf32> -> vector<64x128xf32>
    %cst_3 = arith.constant dense<0.000000e+00> : vector<128xf32>
    %3 = vector.multi_reduction <add>, %2, %cst_3 [0] : vector<64x128xf32> to vector<128xf32>
    %4 = vector.shape_cast %3 : vector<128xf32> to vector<1x128xf32>
    %5 = arith.mulf %2, %2 : vector<64x128xf32>
    %cst_4 = arith.constant dense<0.000000e+00> : vector<128xf32>
    %6 = vector.multi_reduction <add>, %5, %cst_4 [0] : vector<64x128xf32> to vector<128xf32>
    %7 = vector.shape_cast %6 : vector<128xf32> to vector<1x128xf32>
    %8 = tpu.concatenate %4, %7 in 0 : vector<1x128xf32>, vector<1x128xf32> -> vector<2x128xf32>
    %9 = vector.shape_cast %8 : vector<2x128xf32> to vector<1x2x128xf32>
    %c0_5 = arith.constant 0 : index
    %c0_6 = arith.constant 0 : index
    %c0_7 = arith.constant 0 : index
    %10 = vector.load %arg4[%c0_5, %c0_6, %c0_7] : memref<1x2x128xf32, #tpu.memory_space<vmem>>, vector<1x2x128xf32>
    tpu.vector_store %arg4[%c0_5, %c0_6, %c0_7], %9 {strides = array<i32>} : memref<1x2x128xf32, #tpu.memory_space<vmem>>, vector<1x2x128xf32>,
    %11 = arith.truncf %2 : vector<64x128xf32> to vector<64x128xbf16>
    %c0_8 = arith.constant 0 : index
    %c0_9 = arith.constant 0 : index
    %12 = vector.load %arg3[%c0_8, %c0_9] : memref<64x128xbf16, #tpu.memory_space<vmem>>, vector<64x128xbf16>
    tpu.vector_store %arg3[%c0_8, %c0_9], %11 {strides = array<i32>} : memref<64x128xbf16, #tpu.memory_space<vmem>>, vector<64x128xbf16>,
    return
  }
  func.func @transform_0(%arg0: i32) -> (i32, i32) {
    %c0_i32 = arith.constant 0 : i32
    %c0_i32_0 = arith.constant 0 : i32
    return %arg0, %c0_i32 : i32, i32
  }
  func.func @transform_1(%arg0: i32) -> (i32, i32) {
    %c0_i32 = arith.constant 0 : i32
    %c0_i32_0 = arith.constant 0 : i32
    %c0_i32_1 = arith.constant 0 : i32
    return %c0_i32, %c0_i32_0 : i32, i32
  }
  func.func @transform_2(%arg0: i32) -> (i32, i32) {
    %c0_i32 = arith.constant 0 : i32
    %c0_i32_0 = arith.constant 0 : i32
    return %arg0, %c0_i32 : i32, i32
  }
  func.func @transform_3(%arg0: i32) -> (i32, i32, i32) {
    %c0_i32 = arith.constant 0 : i32
    %c0_i32_0 = arith.constant 0 : i32
    %c0_i32_1 = arith.constant 0 : i32
    return %arg0, %c0_i32, %c0_i32_0 : i32, i32, i32
  }
}

module attributes {stable_mosaic.version = 11 : i64} {
  func.func @conv2_fused_kernel(%arg0: i32, %arg1: memref<1x10x10x128xbf16, #tpu.memory_space<vmem>>, %arg2: memref<9x128x128xbf16, #tpu.memory_space<vmem>>, %arg3: memref<1x8x8x128xbf16, #tpu.memory_space<vmem>>, %arg4: memref<1x2x128xf32, #tpu.memory_space<vmem>>) attributes {dimension_semantics = [#tpu.dimension_semantics<parallel>], iteration_bounds = array<i64: 2>, scalar_prefetch = 0 : i64, scratch_operands = 0 : i64, tpu.core_type = #tpu.core_type<tc>, window_params = [{transform_indices = @transform_0, window_bounds = array<i64: 1, 10, 10, 128>}, {pipeline_mode = #tpu.pipeline_mode<synchronous>, transform_indices = @transform_1, window_bounds = array<i64: 9, 128, 128>}, {transform_indices = @transform_2, window_bounds = array<i64: 1, 8, 8, 128>}, {transform_indices = @transform_3, window_bounds = array<i64: 1, 2, 128>}]} {
    %cst = arith.constant 0.000000e+00 : f32
    %0 = vector.broadcast %cst : f32 to vector<64x128xf32>
    %c0 = arith.constant 0 : index
    %c0_0 = arith.constant 0 : index
    %c0_1 = arith.constant 0 : index
    %c0_2 = arith.constant 0 : index
    %1 = vector.load %arg1[%c0, %c0_0, %c0_1, %c0_2] : memref<1x10x10x128xbf16, #tpu.memory_space<vmem>>, vector<1x8x8x128xbf16>
    %2 = vector.shape_cast %1 : vector<1x8x8x128xbf16> to vector<8x8x128xbf16>
    %3 = vector.shape_cast %2 : vector<8x8x128xbf16> to vector<64x128xbf16>
    %c0_3 = arith.constant 0 : index
    %c0_4 = arith.constant 0 : index
    %c0_5 = arith.constant 0 : index
    %4 = vector.load %arg2[%c0_3, %c0_4, %c0_5] : memref<9x128x128xbf16, #tpu.memory_space<vmem>>, vector<1x128x128xbf16>
    %5 = vector.shape_cast %4 : vector<1x128x128xbf16> to vector<128x128xbf16>
    %cst_6 = arith.constant dense<0.000000e+00> : vector<64x128xf32>
    %6 = tpu.matmul %3, %5, %cst_6 {dimension_numbers = #tpu.dot_dimension_numbers<[1], [0], [0], [1], [0, 0, 1, 1], [], []>} : vector<64x128xbf16>, vector<128x128xbf16>, vector<64x128xf32> -> vector<64x128xf32>
    %7 = arith.addf %0, %6 : vector<64x128xf32>
    %c0_7 = arith.constant 0 : index
    %c0_8 = arith.constant 0 : index
    %c1 = arith.constant 1 : index
    %c0_9 = arith.constant 0 : index
    %8 = vector.load %arg1[%c0_7, %c0_8, %c1, %c0_9] : memref<1x10x10x128xbf16, #tpu.memory_space<vmem>>, vector<1x8x8x128xbf16>
    %9 = vector.shape_cast %8 : vector<1x8x8x128xbf16> to vector<8x8x128xbf16>
    %10 = vector.shape_cast %9 : vector<8x8x128xbf16> to vector<64x128xbf16>
    %c1_10 = arith.constant 1 : index
    %c0_11 = arith.constant 0 : index
    %c0_12 = arith.constant 0 : index
    %11 = vector.load %arg2[%c1_10, %c0_11, %c0_12] : memref<9x128x128xbf16, #tpu.memory_space<vmem>>, vector<1x128x128xbf16>
    %12 = vector.shape_cast %11 : vector<1x128x128xbf16> to vector<128x128xbf16>
    %cst_13 = arith.constant dense<0.000000e+00> : vector<64x128xf32>
    %13 = tpu.matmul %10, %12, %cst_13 {dimension_numbers = #tpu.dot_dimension_numbers<[1], [0], [0], [1], [0, 0, 1, 1], [], []>} : vector<64x128xbf16>, vector<128x128xbf16>, vector<64x128xf32> -> vector<64x128xf32>
    %14 = arith.addf %7, %13 : vector<64x128xf32>
    %c0_14 = arith.constant 0 : index
    %c0_15 = arith.constant 0 : index
    %c2 = arith.constant 2 : index
    %c0_16 = arith.constant 0 : index
    %15 = vector.load %arg1[%c0_14, %c0_15, %c2, %c0_16] : memref<1x10x10x128xbf16, #tpu.memory_space<vmem>>, vector<1x8x8x128xbf16>
    %16 = vector.shape_cast %15 : vector<1x8x8x128xbf16> to vector<8x8x128xbf16>
    %17 = vector.shape_cast %16 : vector<8x8x128xbf16> to vector<64x128xbf16>
    %c2_17 = arith.constant 2 : index
    %c0_18 = arith.constant 0 : index
    %c0_19 = arith.constant 0 : index
    %18 = vector.load %arg2[%c2_17, %c0_18, %c0_19] : memref<9x128x128xbf16, #tpu.memory_space<vmem>>, vector<1x128x128xbf16>
    %19 = vector.shape_cast %18 : vector<1x128x128xbf16> to vector<128x128xbf16>
    %cst_20 = arith.constant dense<0.000000e+00> : vector<64x128xf32>
    %20 = tpu.matmul %17, %19, %cst_20 {dimension_numbers = #tpu.dot_dimension_numbers<[1], [0], [0], [1], [0, 0, 1, 1], [], []>} : vector<64x128xbf16>, vector<128x128xbf16>, vector<64x128xf32> -> vector<64x128xf32>
    %21 = arith.addf %14, %20 : vector<64x128xf32>
    %c0_21 = arith.constant 0 : index
    %c1_22 = arith.constant 1 : index
    %c0_23 = arith.constant 0 : index
    %c0_24 = arith.constant 0 : index
    %22 = vector.load %arg1[%c0_21, %c1_22, %c0_23, %c0_24] : memref<1x10x10x128xbf16, #tpu.memory_space<vmem>>, vector<1x8x8x128xbf16>
    %23 = vector.shape_cast %22 : vector<1x8x8x128xbf16> to vector<8x8x128xbf16>
    %24 = vector.shape_cast %23 : vector<8x8x128xbf16> to vector<64x128xbf16>
    %c3 = arith.constant 3 : index
    %c0_25 = arith.constant 0 : index
    %c0_26 = arith.constant 0 : index
    %25 = vector.load %arg2[%c3, %c0_25, %c0_26] : memref<9x128x128xbf16, #tpu.memory_space<vmem>>, vector<1x128x128xbf16>
    %26 = vector.shape_cast %25 : vector<1x128x128xbf16> to vector<128x128xbf16>
    %cst_27 = arith.constant dense<0.000000e+00> : vector<64x128xf32>
    %27 = tpu.matmul %24, %26, %cst_27 {dimension_numbers = #tpu.dot_dimension_numbers<[1], [0], [0], [1], [0, 0, 1, 1], [], []>} : vector<64x128xbf16>, vector<128x128xbf16>, vector<64x128xf32> -> vector<64x128xf32>
    %28 = arith.addf %21, %27 : vector<64x128xf32>
    %c0_28 = arith.constant 0 : index
    %c1_29 = arith.constant 1 : index
    %c1_30 = arith.constant 1 : index
    %c0_31 = arith.constant 0 : index
    %29 = vector.load %arg1[%c0_28, %c1_29, %c1_30, %c0_31] : memref<1x10x10x128xbf16, #tpu.memory_space<vmem>>, vector<1x8x8x128xbf16>
    %30 = vector.shape_cast %29 : vector<1x8x8x128xbf16> to vector<8x8x128xbf16>
    %31 = vector.shape_cast %30 : vector<8x8x128xbf16> to vector<64x128xbf16>
    %c4 = arith.constant 4 : index
    %c0_32 = arith.constant 0 : index
    %c0_33 = arith.constant 0 : index
    %32 = vector.load %arg2[%c4, %c0_32, %c0_33] : memref<9x128x128xbf16, #tpu.memory_space<vmem>>, vector<1x128x128xbf16>
    %33 = vector.shape_cast %32 : vector<1x128x128xbf16> to vector<128x128xbf16>
    %cst_34 = arith.constant dense<0.000000e+00> : vector<64x128xf32>
    %34 = tpu.matmul %31, %33, %cst_34 {dimension_numbers = #tpu.dot_dimension_numbers<[1], [0], [0], [1], [0, 0, 1, 1], [], []>} : vector<64x128xbf16>, vector<128x128xbf16>, vector<64x128xf32> -> vector<64x128xf32>
    %35 = arith.addf %28, %34 : vector<64x128xf32>
    %c0_35 = arith.constant 0 : index
    %c1_36 = arith.constant 1 : index
    %c2_37 = arith.constant 2 : index
    %c0_38 = arith.constant 0 : index
    %36 = vector.load %arg1[%c0_35, %c1_36, %c2_37, %c0_38] : memref<1x10x10x128xbf16, #tpu.memory_space<vmem>>, vector<1x8x8x128xbf16>
    %37 = vector.shape_cast %36 : vector<1x8x8x128xbf16> to vector<8x8x128xbf16>
    %38 = vector.shape_cast %37 : vector<8x8x128xbf16> to vector<64x128xbf16>
    %c5 = arith.constant 5 : index
    %c0_39 = arith.constant 0 : index
    %c0_40 = arith.constant 0 : index
    %39 = vector.load %arg2[%c5, %c0_39, %c0_40] : memref<9x128x128xbf16, #tpu.memory_space<vmem>>, vector<1x128x128xbf16>
    %40 = vector.shape_cast %39 : vector<1x128x128xbf16> to vector<128x128xbf16>
    %cst_41 = arith.constant dense<0.000000e+00> : vector<64x128xf32>
    %41 = tpu.matmul %38, %40, %cst_41 {dimension_numbers = #tpu.dot_dimension_numbers<[1], [0], [0], [1], [0, 0, 1, 1], [], []>} : vector<64x128xbf16>, vector<128x128xbf16>, vector<64x128xf32> -> vector<64x128xf32>
    %42 = arith.addf %35, %41 : vector<64x128xf32>
    %c0_42 = arith.constant 0 : index
    %c2_43 = arith.constant 2 : index
    %c0_44 = arith.constant 0 : index
    %c0_45 = arith.constant 0 : index
    %43 = vector.load %arg1[%c0_42, %c2_43, %c0_44, %c0_45] : memref<1x10x10x128xbf16, #tpu.memory_space<vmem>>, vector<1x8x8x128xbf16>
    %44 = vector.shape_cast %43 : vector<1x8x8x128xbf16> to vector<8x8x128xbf16>
    %45 = vector.shape_cast %44 : vector<8x8x128xbf16> to vector<64x128xbf16>
    %c6 = arith.constant 6 : index
    %c0_46 = arith.constant 0 : index
    %c0_47 = arith.constant 0 : index
    %46 = vector.load %arg2[%c6, %c0_46, %c0_47] : memref<9x128x128xbf16, #tpu.memory_space<vmem>>, vector<1x128x128xbf16>
    %47 = vector.shape_cast %46 : vector<1x128x128xbf16> to vector<128x128xbf16>
    %cst_48 = arith.constant dense<0.000000e+00> : vector<64x128xf32>
    %48 = tpu.matmul %45, %47, %cst_48 {dimension_numbers = #tpu.dot_dimension_numbers<[1], [0], [0], [1], [0, 0, 1, 1], [], []>} : vector<64x128xbf16>, vector<128x128xbf16>, vector<64x128xf32> -> vector<64x128xf32>
    %49 = arith.addf %42, %48 : vector<64x128xf32>
    %c0_49 = arith.constant 0 : index
    %c2_50 = arith.constant 2 : index
    %c1_51 = arith.constant 1 : index
    %c0_52 = arith.constant 0 : index
    %50 = vector.load %arg1[%c0_49, %c2_50, %c1_51, %c0_52] : memref<1x10x10x128xbf16, #tpu.memory_space<vmem>>, vector<1x8x8x128xbf16>
    %51 = vector.shape_cast %50 : vector<1x8x8x128xbf16> to vector<8x8x128xbf16>
    %52 = vector.shape_cast %51 : vector<8x8x128xbf16> to vector<64x128xbf16>
    %c7 = arith.constant 7 : index
    %c0_53 = arith.constant 0 : index
    %c0_54 = arith.constant 0 : index
    %53 = vector.load %arg2[%c7, %c0_53, %c0_54] : memref<9x128x128xbf16, #tpu.memory_space<vmem>>, vector<1x128x128xbf16>
    %54 = vector.shape_cast %53 : vector<1x128x128xbf16> to vector<128x128xbf16>
    %cst_55 = arith.constant dense<0.000000e+00> : vector<64x128xf32>
    %55 = tpu.matmul %52, %54, %cst_55 {dimension_numbers = #tpu.dot_dimension_numbers<[1], [0], [0], [1], [0, 0, 1, 1], [], []>} : vector<64x128xbf16>, vector<128x128xbf16>, vector<64x128xf32> -> vector<64x128xf32>
    %56 = arith.addf %49, %55 : vector<64x128xf32>
    %c0_56 = arith.constant 0 : index
    %c2_57 = arith.constant 2 : index
    %c2_58 = arith.constant 2 : index
    %c0_59 = arith.constant 0 : index
    %57 = vector.load %arg1[%c0_56, %c2_57, %c2_58, %c0_59] : memref<1x10x10x128xbf16, #tpu.memory_space<vmem>>, vector<1x8x8x128xbf16>
    %58 = vector.shape_cast %57 : vector<1x8x8x128xbf16> to vector<8x8x128xbf16>
    %59 = vector.shape_cast %58 : vector<8x8x128xbf16> to vector<64x128xbf16>
    %c8 = arith.constant 8 : index
    %c0_60 = arith.constant 0 : index
    %c0_61 = arith.constant 0 : index
    %60 = vector.load %arg2[%c8, %c0_60, %c0_61] : memref<9x128x128xbf16, #tpu.memory_space<vmem>>, vector<1x128x128xbf16>
    %61 = vector.shape_cast %60 : vector<1x128x128xbf16> to vector<128x128xbf16>
    %cst_62 = arith.constant dense<0.000000e+00> : vector<64x128xf32>
    %62 = tpu.matmul %59, %61, %cst_62 {dimension_numbers = #tpu.dot_dimension_numbers<[1], [0], [0], [1], [0, 0, 1, 1], [], []>} : vector<64x128xbf16>, vector<128x128xbf16>, vector<64x128xf32> -> vector<64x128xf32>
    %63 = arith.addf %56, %62 : vector<64x128xf32>
    %cst_63 = arith.constant dense<0.000000e+00> : vector<128xf32>
    %64 = vector.multi_reduction <add>, %63, %cst_63 [0] : vector<64x128xf32> to vector<128xf32>
    %65 = vector.shape_cast %64 : vector<128xf32> to vector<1x128xf32>
    %66 = arith.mulf %63, %63 : vector<64x128xf32>
    %cst_64 = arith.constant dense<0.000000e+00> : vector<128xf32>
    %67 = vector.multi_reduction <add>, %66, %cst_64 [0] : vector<64x128xf32> to vector<128xf32>
    %68 = vector.shape_cast %67 : vector<128xf32> to vector<1x128xf32>
    %69 = tpu.concatenate %65, %68 in 0 : vector<1x128xf32>, vector<1x128xf32> -> vector<2x128xf32>
    %70 = vector.shape_cast %69 : vector<2x128xf32> to vector<1x2x128xf32>
    %c0_65 = arith.constant 0 : index
    %c0_66 = arith.constant 0 : index
    %c0_67 = arith.constant 0 : index
    %71 = vector.load %arg4[%c0_65, %c0_66, %c0_67] : memref<1x2x128xf32, #tpu.memory_space<vmem>>, vector<1x2x128xf32>
    tpu.vector_store %arg4[%c0_65, %c0_66, %c0_67], %70 {strides = array<i32>} : memref<1x2x128xf32, #tpu.memory_space<vmem>>, vector<1x2x128xf32>,
    %72 = vector.shape_cast %63 : vector<64x128xf32> to vector<1x8x8x128xf32>
    %73 = arith.truncf %72 : vector<1x8x8x128xf32> to vector<1x8x8x128xbf16>
    %c0_68 = arith.constant 0 : index
    %c0_69 = arith.constant 0 : index
    %c0_70 = arith.constant 0 : index
    %c0_71 = arith.constant 0 : index
    %74 = vector.load %arg3[%c0_68, %c0_69, %c0_70, %c0_71] : memref<1x8x8x128xbf16, #tpu.memory_space<vmem>>, vector<1x8x8x128xbf16>
    tpu.vector_store %arg3[%c0_68, %c0_69, %c0_70, %c0_71], %73 {strides = array<i32>} : memref<1x8x8x128xbf16, #tpu.memory_space<vmem>>, vector<1x8x8x128xbf16>,
    return
  }
  func.func @transform_0(%arg0: i32) -> (i32, i32, i32, i32) {
    %c0_i32 = arith.constant 0 : i32
    %c0_i32_0 = arith.constant 0 : i32
    %c0_i32_1 = arith.constant 0 : i32
    %c0_i32_2 = arith.constant 0 : i32
    return %arg0, %c0_i32, %c0_i32_0, %c0_i32_1 : i32, i32, i32, i32
  }
  func.func @transform_1(%arg0: i32) -> (i32, i32, i32) {
    %c0_i32 = arith.constant 0 : i32
    %c0_i32_0 = arith.constant 0 : i32
    %c0_i32_1 = arith.constant 0 : i32
    %c0_i32_2 = arith.constant 0 : i32
    return %c0_i32, %c0_i32_0, %c0_i32_1 : i32, i32, i32
  }
  func.func @transform_2(%arg0: i32) -> (i32, i32, i32, i32) {
    %c0_i32 = arith.constant 0 : i32
    %c0_i32_0 = arith.constant 0 : i32
    %c0_i32_1 = arith.constant 0 : i32
    %c0_i32_2 = arith.constant 0 : i32
    return %arg0, %c0_i32, %c0_i32_0, %c0_i32_1 : i32, i32, i32, i32
  }
  func.func @transform_3(%arg0: i32) -> (i32, i32, i32) {
    %c0_i32 = arith.constant 0 : i32
    %c0_i32_0 = arith.constant 0 : i32
    %c0_i32_1 = arith.constant 0 : i32
    return %arg0, %c0_i32, %c0_i32_0 : i32, i32, i32
  }
}

module attributes {stable_mosaic.version = 11 : i64} {
  func.func @bn_relu_mm_stats_kernel(%arg0: i32, %arg1: memref<64x128xbf16, #tpu.memory_space<vmem>>, %arg2: memref<1x128xf32, #tpu.memory_space<vmem>>, %arg3: memref<1x128xf32, #tpu.memory_space<vmem>>, %arg4: memref<128x128xbf16, #tpu.memory_space<vmem>>, %arg5: memref<64x128xbf16, #tpu.memory_space<vmem>>, %arg6: memref<1x2x128xf32, #tpu.memory_space<vmem>>) attributes {dimension_semantics = [#tpu.dimension_semantics<parallel>], iteration_bounds = array<i64: 2>, scalar_prefetch = 0 : i64, scratch_operands = 0 : i64, tpu.core_type = #tpu.core_type<tc>, window_params = [{transform_indices = @transform_0, window_bounds = array<i64: 64, 128>}, {pipeline_mode = #tpu.pipeline_mode<synchronous>, transform_indices = @transform_1, window_bounds = array<i64: 1, 128>}, {pipeline_mode = #tpu.pipeline_mode<synchronous>, transform_indices = @transform_2, window_bounds = array<i64: 1, 128>}, {pipeline_mode = #tpu.pipeline_mode<synchronous>, transform_indices = @transform_3, window_bounds = array<i64: 128, 128>}, {transform_indices = @transform_4, window_bounds = array<i64: 64, 128>}, {transform_indices = @transform_5, window_bounds = array<i64: 1, 2, 128>}]} {
    %c0 = arith.constant 0 : index
    %c0_0 = arith.constant 0 : index
    %0 = vector.load %arg1[%c0, %c0_0] : memref<64x128xbf16, #tpu.memory_space<vmem>>, vector<64x128xbf16>
    %1 = arith.extf %0 : vector<64x128xbf16> to vector<64x128xf32>
    %c0_1 = arith.constant 0 : index
    %c0_2 = arith.constant 0 : index
    %2 = vector.load %arg2[%c0_1, %c0_2] : memref<1x128xf32, #tpu.memory_space<vmem>>, vector<1x128xf32>
    %3 = vector.broadcast %2 : vector<1x128xf32> to vector<64x128xf32>
    %4 = arith.mulf %1, %3 : vector<64x128xf32>
    %c0_3 = arith.constant 0 : index
    %c0_4 = arith.constant 0 : index
    %5 = vector.load %arg3[%c0_3, %c0_4] : memref<1x128xf32, #tpu.memory_space<vmem>>, vector<1x128xf32>
    %6 = vector.broadcast %5 : vector<1x128xf32> to vector<64x128xf32>
    %7 = arith.addf %4, %6 : vector<64x128xf32>
    %cst = arith.constant 0.000000e+00 : f32
    %8 = vector.broadcast %cst : f32 to vector<64x128xf32>
    %9 = arith.maximumf %7, %8 : vector<64x128xf32>
    %10 = arith.truncf %9 : vector<64x128xf32> to vector<64x128xbf16>
    %c0_5 = arith.constant 0 : index
    %c0_6 = arith.constant 0 : index
    %11 = vector.load %arg4[%c0_5, %c0_6] : memref<128x128xbf16, #tpu.memory_space<vmem>>, vector<128x128xbf16>
    %cst_7 = arith.constant dense<0.000000e+00> : vector<64x128xf32>
    %12 = tpu.matmul %10, %11, %cst_7 {dimension_numbers = #tpu.dot_dimension_numbers<[1], [0], [0], [1], [0, 0, 1, 1], [], []>} : vector<64x128xbf16>, vector<128x128xbf16>, vector<64x128xf32> -> vector<64x128xf32>
    %cst_8 = arith.constant dense<0.000000e+00> : vector<128xf32>
    %13 = vector.multi_reduction <add>, %12, %cst_8 [0] : vector<64x128xf32> to vector<128xf32>
    %14 = vector.shape_cast %13 : vector<128xf32> to vector<1x128xf32>
    %15 = arith.mulf %12, %12 : vector<64x128xf32>
    %cst_9 = arith.constant dense<0.000000e+00> : vector<128xf32>
    %16 = vector.multi_reduction <add>, %15, %cst_9 [0] : vector<64x128xf32> to vector<128xf32>
    %17 = vector.shape_cast %16 : vector<128xf32> to vector<1x128xf32>
    %18 = tpu.concatenate %14, %17 in 0 : vector<1x128xf32>, vector<1x128xf32> -> vector<2x128xf32>
    %19 = vector.shape_cast %18 : vector<2x128xf32> to vector<1x2x128xf32>
    %c0_10 = arith.constant 0 : index
    %c0_11 = arith.constant 0 : index
    %c0_12 = arith.constant 0 : index
    %20 = vector.load %arg6[%c0_10, %c0_11, %c0_12] : memref<1x2x128xf32, #tpu.memory_space<vmem>>, vector<1x2x128xf32>
    tpu.vector_store %arg6[%c0_10, %c0_11, %c0_12], %19 {strides = array<i32>} : memref<1x2x128xf32, #tpu.memory_space<vmem>>, vector<1x2x128xf32>,
    %21 = arith.truncf %12 : vector<64x128xf32> to vector<64x128xbf16>
    %c0_13 = arith.constant 0 : index
    %c0_14 = arith.constant 0 : index
    %22 = vector.load %arg5[%c0_13, %c0_14] : memref<64x128xbf16, #tpu.memory_space<vmem>>, vector<64x128xbf16>
    tpu.vector_store %arg5[%c0_13, %c0_14], %21 {strides = array<i32>} : memref<64x128xbf16, #tpu.memory_space<vmem>>, vector<64x128xbf16>,
    return
  }
  func.func @transform_0(%arg0: i32) -> (i32, i32) {
    %c0_i32 = arith.constant 0 : i32
    %c0_i32_0 = arith.constant 0 : i32
    return %arg0, %c0_i32 : i32, i32
  }
  func.func @transform_1(%arg0: i32) -> (i32, i32) {
    %c0_i32 = arith.constant 0 : i32
    %c0_i32_0 = arith.constant 0 : i32
    %c0_i32_1 = arith.constant 0 : i32
    return %c0_i32, %c0_i32_0 : i32, i32
  }
  func.func @transform_2(%arg0: i32) -> (i32, i32) {
    %c0_i32 = arith.constant 0 : i32
    %c0_i32_0 = arith.constant 0 : i32
    %c0_i32_1 = arith.constant 0 : i32
    return %c0_i32, %c0_i32_0 : i32, i32
  }
  func.func @transform_3(%arg0: i32) -> (i32, i32) {
    %c0_i32 = arith.constant 0 : i32
    %c0_i32_0 = arith.constant 0 : i32
    %c0_i32_1 = arith.constant 0 : i32
    return %c0_i32, %c0_i32_0 : i32, i32
  }
  func.func @transform_4(%arg0: i32) -> (i32, i32) {
    %c0_i32 = arith.constant 0 : i32
    %c0_i32_0 = arith.constant 0 : i32
    return %arg0, %c0_i32 : i32, i32
  }
  func.func @transform_5(%arg0: i32) -> (i32, i32, i32) {
    %c0_i32 = arith.constant 0 : i32
    %c0_i32_0 = arith.constant 0 : i32
    %c0_i32_1 = arith.constant 0 : i32
    return %arg0, %c0_i32, %c0_i32_0 : i32, i32, i32
  }
}

module attributes {stable_mosaic.version = 11 : i64} {
  func.func @bn_add_relu_identity_kernel(%arg0: i32, %arg1: memref<64x128xbf16, #tpu.memory_space<vmem>>, %arg2: memref<1x128xf32, #tpu.memory_space<vmem>>, %arg3: memref<1x128xf32, #tpu.memory_space<vmem>>, %arg4: memref<64x32xbf16, #tpu.memory_space<vmem>>, %arg5: memref<64x128xf32, #tpu.memory_space<vmem>>) attributes {dimension_semantics = [#tpu.dimension_semantics<parallel>], iteration_bounds = array<i64: 2>, scalar_prefetch = 0 : i64, scratch_operands = 0 : i64, tpu.core_type = #tpu.core_type<tc>, window_params = [{transform_indices = @transform_0, window_bounds = array<i64: 64, 128>}, {pipeline_mode = #tpu.pipeline_mode<synchronous>, transform_indices = @transform_1, window_bounds = array<i64: 1, 128>}, {pipeline_mode = #tpu.pipeline_mode<synchronous>, transform_indices = @transform_2, window_bounds = array<i64: 1, 128>}, {transform_indices = @transform_3, window_bounds = array<i64: 64, 32>}, {transform_indices = @transform_4, window_bounds = array<i64: 64, 128>}]} {
    %c0 = arith.constant 0 : index
    %c0_0 = arith.constant 0 : index
    %0 = vector.load %arg1[%c0, %c0_0] : memref<64x128xbf16, #tpu.memory_space<vmem>>, vector<64x128xbf16>
    %1 = arith.extf %0 : vector<64x128xbf16> to vector<64x128xf32>
    %c0_1 = arith.constant 0 : index
    %c0_2 = arith.constant 0 : index
    %2 = vector.load %arg2[%c0_1, %c0_2] : memref<1x128xf32, #tpu.memory_space<vmem>>, vector<1x128xf32>
    %3 = vector.broadcast %2 : vector<1x128xf32> to vector<64x128xf32>
    %4 = arith.mulf %1, %3 : vector<64x128xf32>
    %c0_3 = arith.constant 0 : index
    %c0_4 = arith.constant 0 : index
    %5 = vector.load %arg3[%c0_3, %c0_4] : memref<1x128xf32, #tpu.memory_space<vmem>>, vector<1x128xf32>
    %6 = vector.broadcast %5 : vector<1x128xf32> to vector<64x128xf32>
    %7 = arith.addf %4, %6 : vector<64x128xf32>
    %c0_5 = arith.constant 0 : index
    %c0_6 = arith.constant 0 : index
    %8 = vector.load %arg4[%c0_5, %c0_6] : memref<64x32xbf16, #tpu.memory_space<vmem>>, vector<64x32xbf16>
    %9 = arith.extf %8 : vector<64x32xbf16> to vector<64x32xf32>
    %cst = arith.constant 0.000000e+00 : f32
    %10 = vector.broadcast %cst : f32 to vector<64x96xf32>
    %11 = tpu.concatenate %9, %10 in 1 : vector<64x32xf32>, vector<64x96xf32> -> vector<64x128xf32>
    %12 = arith.addf %7, %11 : vector<64x128xf32>
    %cst_7 = arith.constant 0.000000e+00 : f32
    %13 = vector.broadcast %cst_7 : f32 to vector<64x128xf32>
    %14 = arith.maximumf %12, %13 : vector<64x128xf32>
    %c0_8 = arith.constant 0 : index
    %c0_9 = arith.constant 0 : index
    %15 = vector.load %arg5[%c0_8, %c0_9] : memref<64x128xf32, #tpu.memory_space<vmem>>, vector<64x128xf32>
    tpu.vector_store %arg5[%c0_8, %c0_9], %14 {strides = array<i32>} : memref<64x128xf32, #tpu.memory_space<vmem>>, vector<64x128xf32>,
    return
  }
  func.func @transform_0(%arg0: i32) -> (i32, i32) {
    %c0_i32 = arith.constant 0 : i32
    %c0_i32_0 = arith.constant 0 : i32
    return %arg0, %c0_i32 : i32, i32
  }
  func.func @transform_1(%arg0: i32) -> (i32, i32) {
    %c0_i32 = arith.constant 0 : i32
    %c0_i32_0 = arith.constant 0 : i32
    %c0_i32_1 = arith.constant 0 : i32
    return %c0_i32, %c0_i32_0 : i32, i32
  }
  func.func @transform_2(%arg0: i32) -> (i32, i32) {
    %c0_i32 = arith.constant 0 : i32
    %c0_i32_0 = arith.constant 0 : i32
    %c0_i32_1 = arith.constant 0 : i32
    return %c0_i32, %c0_i32_0 : i32, i32
  }
  func.func @transform_3(%arg0: i32) -> (i32, i32) {
    %c0_i32 = arith.constant 0 : i32
    %c0_i32_0 = arith.constant 0 : i32
    return %arg0, %c0_i32 : i32, i32
  }
  func.func @transform_4(%arg0: i32) -> (i32, i32) {
    %c0_i32 = arith.constant 0 : i32
    %c0_i32_0 = arith.constant 0 : i32
    return %arg0, %c0_i32 : i32, i32
  }
}

</mosaic_0001>

<bundles_post_ra>
// kernel: a_call__.4
= control target key start
LH: loop header
LB: loop body
LE: loop exit
PB: predicated region body
PF: predicated region fallthrough
CT: control target
= control target key end

     0   :  { %9 = vsyncpa [#allocation3], 0  ;;  %s674_s12 = smov 0   ;;  %s738_s0 = inlined_call_operand.vmem [shape: bf16[128,32], index: 0, kind: input, shape index: {}]   ;;  %s739_s1 = inlined_call_operand.hbm [shape: bf16[32,128], index: 1, kind: input, shape index: {}]   ;;  %s740_s2 = inlined_call_operand.vmem [shape: bf16[128,128], index: 2, kind: output, shape index: {0}]   ;;  %s741_s3 = inlined_call_operand.vmem [shape: f32[2,2,128], index: 3, kind: output, shape index: {1}]  }
   0x1 LB: > { %s680_s13 = sadd.s32 4294967295, %s649_s12   ;;  %p501_p0 = scmp.ge.s32.totalorder %s649_s12, 1  ;;  %s649_s12 = sphi %s674_s12, %s15_s12  }
   0x2   : > { %p119_p1 = scmp.lt.s32.totalorder %s649_s12, 3  ;;  %s651_s14 = smov [#allocation2]  }
   0x3   : > { %s131_s15 = sshll.u32 %s651_s14, 4  ;;  %p742_p3 = scmp.eq.s32.totalorder %s680_s13, 0  ;;  %s132_s15 = int_to_ptr.vmem [resolvable:$true] %s131_s15 }
   0x4   : > { %p684_p2 = pnand %p501_p0, %p119_p1  ;;  %s611_s20 = scalar_lea.hbm %s739_s1, 256 }
   0x5   : > { %p612_p6 = scmp.ne.s32.totalorder %s739_s1, %s611_s20  ;;  %p618_p10 = scmp.lt.u32.totalorder %s611_s20, %s739_s1 }
   0x6   : > { %s744_s16 = scalar_select %p684_p2, 1, 0 }
   0x7   : > { %p588_p4 = pneg %p684_p2 }
   0x9   : > { %p693_p5 = pnand %p742_p3, %p588_p4 }
   0xb   : > { %p613_p7 = pneg %p693_p5 }
   0xd   : > { %p614_p8 = pnand %p613_p7, %p612_p6 }
   0xf   : > { %p615_p9 = pneg %p614_p8 }
  0x11   : > { %p620_p11 = pnand %p618_p10, %p615_p9 }
  0x13   : > { %623 = shalt.err (!%p620_p11)
}
  0x14   : > { %s624_s25 = scalar_lea.vmem %s132_s15, 256  ;;  %p632_p1 = scmp.lt.s32.totalorder %s132_s15, %s132_s15 }
  0x15   : > { %p625_p12 = scmp.ne.s32.totalorder %s132_s15, %s624_s25  ;;  %p633_p4 = scmp.lt.s32.totalorder %s624_s25, %s624_s25 }
  0x17   : > { %p627_p13 = pnand %p625_p12, %p613_p7  ;;  %p634_p3 = por %p633_p4, %p632_p1 }
  0x19   : > { %p628_p0 = pneg %p627_p13 }
  0x1b   : > { %p635_p2 = pnand %p634_p3, %p628_p0 }
  0x1d   : > { %638 = shalt.err (!%p635_p2)
}
  0x1e   : > { %s652_s26 = smov 64   ;;  %s653_s27 = smov 4  }
  0x1f   : > { %591 = dma.hbm_to_vmem [thread:$0]  (!%p693_p5), %s739_s1, 256, %s132_s15, [#allocation3], %s652_s26, %s652_s26, %s653_s27  }
  0x20   : > { %p746_p6 = scmp.ne.s32.totalorder %s744_s16, 0 }
  0x21   : > { %p747_p8 = scmp.eq.s32.totalorder (!%p746_p6), %s680_s13, 0 }
  0x22   : > { %156 = sbr.rel (%p746_p6) target bundleno = 296 (0x128), region = 28 }
  0x29   : > { %644 = dma.done.wait (%p747_p8), [#allocation3], 256   ;;  %p748_p7 = pmov %p747_p8 }
  0x2a   : > { %s506_s30 = sshll.u32 %s680_s13, 3  ;;  %v605_v0 = vld [vmem:[#allocation2] sm:$0xff]   ;;  %v606_v1 = vld [vmem:[#allocation2 + $0x8] sm:$0xff]   ;;  %vm245_vm0 = vcmask 261120   ;;  %p196_p3 = scmp.lt.s32.totalorder %s680_s13, 1  ;;  %vm357_vm1 = vcmask 1040384  }
  0x2b   : > { %646 = vsyncadd (%p748_p7), [#allocation3], 4294967040  ;;  %p185_p2 = scmp.lt.s32.totalorder %s506_s30, 15  ;;  %568 = vmatprep.subr.bf16.mxu0 %v605_v0  ;;  %580 = vmatprep.subr.bf16.mxu1 %v605_v0 }
  0x2c   : > { %569 = vmatpush3.bf16.msra.mxu0 %v605_v0  ;;  %582 = vmatpush3.bf16.msra.mxu1 %v605_v0  ;;  %s752_s13 = smov (!%p196_p3, %s680_s13), 1 }
  0x2d   : > { %s750_s30 = smov (!%p185_p2, %s506_s30), 15  ;;  %570 = vmatprep.subr.bf16.mxu0 %v606_v1  ;;  %581 = vmatprep.subr.bf16.mxu1 %v606_v1  ;;  %s510_s11 = sshll.u32 %s752_s13, 1 }
  0x2e   : > { %s507_s4 = sshll.u32 %s750_s30, 2  ;;  %s199_s16 = scalar_lea.vmem %s741_s3, %s510_s11 }
  0x2f   : > { %s188_s7 = scalar_lea.vmem %s738_s0, %s507_s4  ;;  %s194_s10 = scalar_lea.vmem %s740_s2, %s507_s4 }
  0x30   : > { %v607_v2 = vld [vmem:[%s188_s7] sm:$0xff]   ;;  %v609_v3 = vld [vmem:[%s188_s7 + $0x10] sm:$0xff]   ;;  %v608_v4 = vld [vmem:[%s188_s7 + $0x8] sm:$0xff]   ;;  %571 = vmatpush3.bf16.msra.mxu0 %v606_v1  ;;  %583 = vmatpush3.bf16.msra.mxu1 %v606_v1 }
  0x31   : > { %572 = vmatprep.mubr.msk.bf16.mxu0 %vm245_vm0, %v607_v2  ;;  %576 = vmatprep.mubr.msk.bf16.mxu1 %vm245_vm0, %v609_v3  ;;  %v610_v5 = vld [vmem:[%s188_s7 + $0x18] sm:$0xff]  }
  0x33   : > { %573 = vmatmul.mubr.msk.bf16.vlgmr.msra.gmra.mrb[0].mxu0 %vm245_vm0, %v608_v4  ;;  %577 = vmatmul.mubr.msk.bf16.vlgmr.msra.gmra.mrb[0].mxu1 %vm245_vm0, %v610_v5 }
 0x106   : > { %v574_v6 = vpop.f32.mrb[0].mxu0  ;;  %v578_v7 = vpop.f32.mrb[0].mxu1 }
 0x107   : > { %v292_v8 = vpop.f32.mrb[1].mxu0  ;;  %v308_v9 = vpop.f32.mrb[1].mxu1  ;;  %v338_v21 = vmul.f32 %v574_v6, %v574_v6  ;;  %v342_v33 = vmul.f32 %v578_v7, %v578_v7 }
 0x108   : > { %v575_v10 = vpop.f32.mrb[2].mxu0  ;;  %v579_v11 = vpop.f32.mrb[2].mxu1  ;;  %v336_v16 = vmul.f32 %v292_v8, %v292_v8  ;;  %v340_v27 = vmul.f32 %v308_v9, %v308_v9 }
 0x109   : > { %v547_v12 = vpack.c.bf16 %v575_v10, %v574_v6  ;;  %v295_v13 = vpop.f32.mrb[3].mxu0  ;;  %v557_v14 = vpack.c.bf16 %v579_v11, %v578_v7  ;;  %v311_v15 = vpop.f32.mrb[3].mxu1  ;;  %v339_v24 = vmul.f32 %v575_v10, %v575_v10  ;;  %v343_v36 = vmul.f32 %v579_v11, %v579_v11 }
 0x10a   : > { %v323_v17 = vadd.f32 %v295_v13, %v292_v8  ;;  %v337_v18 = vmul.f32 %v295_v13, %v295_v13  ;;  %v542_v19 = vpack.c.bf16 %v295_v13, %v292_v8  ;;  %v552_v20 = vpack.c.bf16 %v311_v15, %v308_v9 }
 0x10b   : > { %559 = vst [vmem:[%s194_s10 + $0x8] sm:$0xff] %v547_v12   ;;  %561 = vst [vmem:[%s194_s10 + $0x18] sm:$0xff] %v557_v14   ;;  %v341_v32 = vmul.f32 %v311_v15, %v311_v15 }
 0x10c   : > { %v324_v22 = vadd.f32 %v574_v6, %v323_v17  ;;  %v344_v23 = vadd.f32 %v337_v18, %v336_v16  ;;  %543 = vst [vmem:[%s194_s10] sm:$0xff] %v542_v19   ;;  %560 = vst [vmem:[%s194_s10 + $0x10] sm:$0xff] %v552_v20  }
 0x10e   : > { %v345_v25 = vadd.f32 %v344_v23, %v338_v21  ;;  %v325_v26 = vadd.f32 %v575_v10, %v324_v22 }
 0x110   : > { %v326_v28 = vadd.f32 %v325_v26, %v308_v9  ;;  %v346_v29 = vadd.f32 %v345_v25, %v339_v24 }
 0x112   : > { %v347_v30 = vadd.f32 %v346_v29, %v340_v27  ;;  %v327_v31 = vadd.f32 %v326_v28, %v311_v15 }
 0x114   : > { %v328_v34 = vadd.f32 %v578_v7, %v327_v31  ;;  %v348_v35 = vadd.f32 %v347_v30, %v341_v32 }
 0x116   : > { %v329_v37 = vadd.f32 %v579_v11, %v328_v34  ;;  %v349_v38 = vadd.f32 %v348_v35, %v342_v33 }
 0x118   : > { %v330_v39 = vrot.slane %v329_v37, 4  ;;  %v350_v40 = vadd.f32 %v349_v38, %v343_v36 }
 0x11a   : > { %v331_v41 = vadd.f32 %v330_v39, %v329_v37  ;;  %v351_v42 = vrot.slane %v350_v40, 4 }
 0x11c   : > { %v332_v43 = vrot.slane %v331_v41, 2  ;;  %v352_v44 = vadd.f32 %v351_v42, %v350_v40 }
 0x11e   : > { %v333_v45 = vadd.f32 %v332_v43, %v331_v41  ;;  %v353_v46 = vrot.slane %v352_v44, 2 }
 0x120   : > { %v334_v47 = vrot.slane %v333_v45, 1  ;;  %v354_v48 = vadd.f32 %v353_v46, %v352_v44 }
 0x122   : > { %v355_v49 = vrot.slane %v354_v48, 1  ;;  %v335_v50 = vadd.f32 %v334_v47, %v333_v45 }
 0x124   : > { %v356_v51 = vadd.f32 %v355_v49, %v354_v48 }
 0x126   : > { %v358_v52 = vsel %vm357_vm1, %v335_v50, %v356_v51 }
 0x127   : > { %359 = vst [vmem:[%s199_s16] sm:$0x3] %v358_v52 }
 0x128 PF: > { %s15_s12 = sadd.s32 1, %s649_s12  }
 0x129   : > { %p12_p5 = scmp.ge.s32.totalorder %s15_s12, 4  }
 0x12b   :  { %14 = sbr.rel (!%p12_p5) target bundleno = 1 (0x1), region = 75 }
 0x132   :  { %436 = vsyncpa [#allocation3], 1 }
 0x133   :  { %438 = vsyncpa [#allocation3 + $0x1], 1 }

// kernel: a_call__.6
= control target key start
LH: loop header
LB: loop body
LE: loop exit
PB: predicated region body
PF: predicated region fallthrough
CT: control target
= control target key end

     0   :  { %s777_s18 = smov 0   ;;  %s839_s0 = inlined_call_operand.vmem [shape: bf16[128,128], index: 0, kind: input, shape index: {}]   ;;  %s840_s1 = inlined_call_operand.vmem [shape: f32[1,128], index: 1, kind: input, shape index: {}]   ;;  %s841_s2 = inlined_call_operand.vmem [shape: f32[1,128], index: 2, kind: input, shape index: {}]   ;;  %s842_s3 = inlined_call_operand.vmem [shape: bf16[128,128], index: 3, kind: input, shape index: {}]   ;;  %s843_s4 = inlined_call_operand.vmem [shape: bf16[128,128], index: 4, kind: output, shape index: {0}]   ;;  %s844_s5 = inlined_call_operand.vmem [shape: f32[2,2,128], index: 5, kind: output, shape index: {1}]  }
   0x1 LB: > { %s783_s19 = sadd.s32 4294967295, %s745_s18   ;;  %p595_p0 = scmp.ge.s32.totalorder %s745_s18, 1  ;;  %s745_s18 = sphi %s777_s18, %s16_s18  }
   0x2   : > { %p191_p1 = scmp.lt.s32.totalorder %s745_s18, 3 }
   0x4   : > { %p192_p2 = pnand %p595_p0, %p191_p1 }
   0x5   : > { %v731_v0 = vld [vmem:[%s842_s3] sm:$0xff] (!%p192_p2)   ;;  %s596_s22 = sshll.u32 (!%p192_p2), %s783_s19, 3  ;;  %v732_v1 = vld [vmem:[%s842_s3 + $0x8] sm:$0xff] (!%p192_p2)   ;;  %v733_v2 = vld [vmem:[%s842_s3 + $0x10] sm:$0xff] (!%p192_p2)   ;;  %p235_p4 = scmp.lt.s32.totalorder (!%p192_p2), %s783_s19, 1  ;;  %vm461_vm0 = vcmask (!%p192_p2), 1040384  }
   0x6   : > { %195 = sbr.rel (%p192_p2) target bundleno = 284 (0x11c), region = 36  ;;  %p224_p3 = scmp.lt.s32.totalorder (!%p192_p2), %s596_s22, 15  ;;  %683 = vmatprep.subr.bf16.mxu0 (!%p192_p2), %v731_v0  ;;  %707 = vmatprep.subr.bf16.mxu1 (!%p192_p2), %v731_v0  ;;  %v734_v3 = vld [vmem:[%s842_s3 + $0x18] sm:$0xff] (!%p192_p2)   ;;  %v601_v5 = vld [vmem:[%s840_s1] ss:$0 sm:$0xff] (!%p192_p2)  ;;  %v736_v29 = vld [vmem:[%s842_s3 + $0x28] sm:$0xff] (!%p192_p2)  }
   0x7   : > { %684 = vmatpush3.bf16.msra.mxu0 (!%p192_p2), %v731_v0  ;;  %715 = vmatpush3.bf16.msra.mxu1 (!%p192_p2), %v731_v0  ;;  %v602_v9 = vld [vmem:[%s841_s2] ss:$0 sm:$0xff] (!%p192_p2)  ;;  %v737_v38 = vld [vmem:[%s842_s3 + $0x30] sm:$0xff] (!%p192_p2)   ;;  %v738_v43 = vld [vmem:[%s842_s3 + $0x38] sm:$0xff] (!%p192_p2)  }
   0x8   : > { %685 = vmatprep.subr.bf16.mxu0 (!%p192_p2), %v732_v1  ;;  %708 = vmatprep.subr.bf16.mxu1 (!%p192_p2), %v732_v1  ;;  %v735_v16 = vld [vmem:[%s842_s3 + $0x20] sm:$0xff] (!%p192_p2)  }
   0xb   : > { %686 = vmatpush3.bf16.msra.mxu0 (!%p192_p2), %v732_v1  ;;  %716 = vmatpush3.bf16.msra.mxu1 (!%p192_p2), %v732_v1 }
   0xc   : > { %687 = vmatprep.subr.bf16.mxu0 (!%p192_p2), %v733_v2  ;;  %709 = vmatprep.subr.bf16.mxu1 (!%p192_p2), %v733_v2 }
   0xd   : > { %s846_s22 = smov (!%p224_p3, %s596_s22), 15  ;;  %s848_s19 = smov (!%p235_p4, %s783_s19), 1 }
   0xe   : > { %s597_s27 = sshll.u32 %s846_s22, 2  ;;  %s600_s22 = sshll.u32 %s848_s19, 1 }
   0xf   : > { %s227_s30 = scalar_lea.vmem %s839_s0, %s597_s27  ;;  %688 = vmatpush3.bf16.msra.mxu0 %v733_v2  ;;  %717 = vmatpush3.bf16.msra.mxu1 %v733_v2  ;;  %s233_s25 = scalar_lea.vmem %s843_s4, %s597_s27 }
  0x10   : > { %v630_v4 = vld [vmem:[%s227_s30] sm:$0xff]   ;;  %v666_v8 = vld [vmem:[%s227_s30 + $0x10] sm:$0xff]   ;;  %v665_v10 = vld [vmem:[%s227_s30 + $0x8] sm:$0xff]   ;;  %689 = vmatprep.subr.bf16.mxu0 %v734_v3  ;;  %710 = vmatprep.subr.bf16.mxu1 %v734_v3  ;;  %s238_s28 = scalar_lea.vmem %s844_s5, %s600_s22 }
  0x11   : > { %v631_v6 = vunpack.c.l.bf16 %v630_v4  ;;  %v632_v7 = vunpack.c.h.bf16 %v630_v4  ;;  %v639_v11 = vunpack.c.l.bf16 %v666_v8  ;;  %v640_v12 = vunpack.c.h.bf16 %v666_v8  ;;  %v667_v15 = vld [vmem:[%s227_s30 + $0x18] sm:$0xff]  }
  0x12   : > { %v635_v20 = vunpack.c.l.bf16 %v665_v10  ;;  %v636_v22 = vunpack.c.h.bf16 %v665_v10  ;;  %v643_v24 = vunpack.c.l.bf16 %v667_v15  ;;  %v644_v25 = vunpack.c.h.bf16 %v667_v15 }
  0x13   : > { %v263_v13 = vmul.f32 %v631_v6, %v601_v5  ;;  %v264_v14 = vmul.f32 %v632_v7, %v601_v5  ;;  %v267_v17 = vmul.f32 %v639_v11, %v601_v5  ;;  %v268_v21 = vmul.f32 %v640_v12, %v601_v5  ;;  %690 = vmatpush3.bf16.msra.mxu0 %v734_v3 }
  0x14   : > { %718 = vmatpush3.bf16.msra.mxu1 %v734_v3  ;;  %691 = vmatprep.subr.bf16.mxu0 %v735_v16  ;;  %v265_v33 = vmul.f32 %v635_v20, %v601_v5  ;;  %v266_v34 = vmul.f32 %v636_v22, %v601_v5  ;;  %v269_v35 = vmul.f32 %v643_v24, %v601_v5 }
  0x15   : > { %v278_v18 = vadd.f32 %v602_v9, %v263_v13  ;;  %v279_v19 = vadd.f32 %v602_v9, %v264_v14  ;;  %v282_v23 = vadd.f32 %v602_v9, %v267_v17  ;;  %v283_v28 = vadd.f32 %v602_v9, %v268_v21  ;;  %711 = vmatprep.subr.bf16.mxu1 %v735_v16 }
  0x16   : > { %v270_v36 = vmul.f32 %v644_v25, %v601_v5  ;;  %v280_v39 = vadd.f32 %v602_v9, %v265_v33  ;;  %v281_v40 = vadd.f32 %v602_v9, %v266_v34  ;;  %v284_v41 = vadd.f32 %v602_v9, %v269_v35 }
  0x17   : > { %v286_v26 = vmax.f32 %v278_v18, 0.0  ;;  %v287_v27 = vmax.f32 %v279_v19, 0.0  ;;  %v290_v30 = vmax.f32 %v282_v23, 0.0  ;;  %v291_v32 = vmax.f32 %v283_v28, 0.0  ;;  %692 = vmatpush3.bf16.msra.mxu0 %v735_v16 }
  0x18   : > { %719 = vmatpush3.bf16.msra.mxu1 %v735_v16  ;;  %693 = vmatprep.subr.bf16.mxu0 %v736_v29  ;;  %v285_v42 = vadd.f32 %v602_v9, %v270_v36  ;;  %v288_v44 = vmax.f32 %v280_v39, 0.0  ;;  %v289_v45 = vmax.f32 %v281_v40, 0.0  ;;  %v292_v46 = vmax.f32 %v284_v41, 0.0 }
  0x19   : > { %v294_v31 = vpack.c.bf16 %v287_v27, %v286_v26  ;;  %v296_v37 = vpack.c.bf16 %v291_v32, %v290_v30  ;;  %712 = vmatprep.subr.bf16.mxu1 %v736_v29 }
  0x1a   : > { %v293_v47 = vmax.f32 %v285_v42, 0.0  ;;  %v295_v48 = vpack.c.bf16 %v289_v45, %v288_v44 }
  0x1b   : > { %699 = vmatprep.mubr.bf16.mxu0 %v294_v31  ;;  %703 = vmatprep.mubr.bf16.mxu1 %v296_v37 }
  0x1c   : > { %694 = vmatpush3.bf16.msra.mxu0 %v736_v29  ;;  %720 = vmatpush3.bf16.msra.mxu1 %v736_v29  ;;  %v297_v49 = vpack.c.bf16 %v293_v47, %v292_v46 }
  0x1d   : > { %695 = vmatprep.subr.bf16.mxu0 %v737_v38  ;;  %713 = vmatprep.subr.bf16.mxu1 %v737_v38 }
  0x20   : > { %696 = vmatpush3.bf16.msra.mxu0 %v737_v38  ;;  %721 = vmatpush3.bf16.msra.mxu1 %v737_v38 }
  0x21   : > { %697 = vmatprep.subr.bf16.mxu0 %v738_v43  ;;  %714 = vmatprep.subr.bf16.mxu1 %v738_v43 }
  0x24   : > { %698 = vmatpush3.bf16.msra.mxu0 %v738_v43  ;;  %722 = vmatpush3.bf16.msra.mxu1 %v738_v43 }
  0x27   : > { %700 = vmatmul.mubr.bf16.vlgmr.msra.gmra.mrb[0].mxu0 %v295_v48  ;;  %704 = vmatmul.mubr.bf16.vlgmr.msra.gmra.mrb[0].mxu1 %v297_v49 }
  0xfa   : > { %v701_v50 = vpop.f32.mrb[0].mxu0  ;;  %v705_v51 = vpop.f32.mrb[0].mxu1 }
  0xfb   : > { %v396_v52 = vpop.f32.mrb[1].mxu0  ;;  %v412_v53 = vpop.f32.mrb[1].mxu1  ;;  %v442_v1 = vmul.f32 %v701_v50, %v701_v50  ;;  %v446_v13 = vmul.f32 %v705_v51, %v705_v51 }
  0xfc   : > { %v702_v54 = vpop.f32.mrb[2].mxu0  ;;  %v706_v55 = vpop.f32.mrb[2].mxu1  ;;  %v440_v60 = vmul.f32 %v396_v52, %v396_v52  ;;  %v444_v7 = vmul.f32 %v412_v53, %v412_v53 }
  0xfd   : > { %v653_v56 = vpack.c.bf16 %v702_v54, %v701_v50  ;;  %v399_v57 = vpop.f32.mrb[3].mxu0  ;;  %v663_v58 = vpack.c.bf16 %v706_v55, %v705_v51  ;;  %v415_v59 = vpop.f32.mrb[3].mxu1  ;;  %v443_v4 = vmul.f32 %v702_v54, %v702_v54  ;;  %v447_v16 = vmul.f32 %v706_v55, %v706_v55 }
  0xfe   : > { %v427_v61 = vadd.f32 %v399_v57, %v396_v52  ;;  %v441_v62 = vmul.f32 %v399_v57, %v399_v57  ;;  %v648_v63 = vpack.c.bf16 %v399_v57, %v396_v52  ;;  %v658_v0 = vpack.c.bf16 %v415_v59, %v412_v53 }
  0xff   : > { %668 = vst [vmem:[%s233_s25 + $0x8] sm:$0xff] %v653_v56   ;;  %670 = vst [vmem:[%s233_s25 + $0x18] sm:$0xff] %v663_v58   ;;  %v445_v12 = vmul.f32 %v415_v59, %v415_v59 }
 0x100   : > { %v428_v2 = vadd.f32 %v701_v50, %v427_v61  ;;  %v448_v3 = vadd.f32 %v441_v62, %v440_v60  ;;  %649 = vst [vmem:[%s233_s25] sm:$0xff] %v648_v63   ;;  %669 = vst [vmem:[%s233_s25 + $0x10] sm:$0xff] %v658_v0  }
 0x102   : > { %v449_v5 = vadd.f32 %v448_v3, %v442_v1  ;;  %v429_v6 = vadd.f32 %v702_v54, %v428_v2 }
 0x104   : > { %v430_v8 = vadd.f32 %v429_v6, %v412_v53  ;;  %v450_v9 = vadd.f32 %v449_v5, %v443_v4 }
 0x106   : > { %v451_v10 = vadd.f32 %v450_v9, %v444_v7  ;;  %v431_v11 = vadd.f32 %v430_v8, %v415_v59 }
 0x108   : > { %v432_v14 = vadd.f32 %v705_v51, %v431_v11  ;;  %v452_v15 = vadd.f32 %v451_v10, %v445_v12 }
 0x10a   : > { %v433_v17 = vadd.f32 %v706_v55, %v432_v14  ;;  %v453_v18 = vadd.f32 %v452_v15, %v446_v13 }
 0x10c   : > { %v434_v19 = vrot.slane %v433_v17, 4  ;;  %v454_v20 = vadd.f32 %v453_v18, %v447_v16 }
 0x10e   : > { %v435_v21 = vadd.f32 %v434_v19, %v433_v17  ;;  %v455_v22 = vrot.slane %v454_v20, 4 }
 0x110   : > { %v436_v23 = vrot.slane %v435_v21, 2  ;;  %v456_v24 = vadd.f32 %v455_v22, %v454_v20 }
 0x112   : > { %v437_v25 = vadd.f32 %v436_v23, %v435_v21  ;;  %v457_v26 = vrot.slane %v456_v24, 2 }
 0x114   : > { %v438_v27 = vrot.slane %v437_v25, 1  ;;  %v458_v28 = vadd.f32 %v457_v26, %v456_v24 }
 0x116   : > { %v459_v29 = vrot.slane %v458_v28, 1  ;;  %v439_v30 = vadd.f32 %v438_v27, %v437_v25 }
 0x118   : > { %v460_v31 = vadd.f32 %v459_v29, %v458_v28 }
 0x11a   : > { %v462_v32 = vsel %vm461_vm0, %v439_v30, %v460_v31 }
 0x11b   : > { %463 = vst [vmem:[%s238_s28] sm:$0x3] %v462_v32 }
 0x11c PF: > { %s16_s18 = sadd.s32 1, %s745_s18  }
 0x11d   : > { %p13_p5 = scmp.ge.s32.totalorder %s16_s18, 4  }
 0x11f   :  { %15 = sbr.rel (!%p13_p5) target bundleno = 1 (0x1), region = 78 }

// kernel: a_call__.7
= control target key start
LH: loop header
LB: loop body
LE: loop exit
PB: predicated region body
PF: predicated region fallthrough
CT: control target
= control target key end

     0   :  { %s480_s15 = smov 0   ;;  %s550_s0 = inlined_call_operand.vmem [shape: bf16[128,128], index: 0, kind: input, shape index: {}]   ;;  %s551_s1 = inlined_call_operand.vmem [shape: f32[1,128], index: 1, kind: input, shape index: {}]   ;;  %s552_s2 = inlined_call_operand.vmem [shape: f32[1,128], index: 2, kind: input, shape index: {}]   ;;  %s553_s3 = inlined_call_operand.vmem [shape: bf16[128,32], index: 3, kind: input, shape index: {}]   ;;  %s554_s4 = inlined_call_operand.vmem [shape: f32[128,128], index: 4, kind: output, shape index: {}]  }
   0x1 LB: > { %s386_s16 = sadd.s32 4294967295, %s453_s15   ;;  %p390_p0 = scmp.ge.s32.totalorder %s453_s15, 1  ;;  %s453_s15 = sphi %s480_s15, %s14_s15  }
   0x2   : > { %p174_p1 = scmp.lt.s32.totalorder %s453_s15, 3 }
   0x4   : > { %p175_p2 = pnand %p390_p0, %p174_p1 }
   0x5   : > { %s391_s17 = sshll.u32 (!%p175_p2), %s386_s16, 3  ;;  %v504_v0 = vld [vmem:[%s551_s1] ss:$0 sm:$0xff] (!%p175_p2)  ;;  %vm285_vm0 = vcmask (!%p175_p2), 261120  }
   0x6   : > { %178 = sbr.rel (%p175_p2) target bundleno = 38 (0x26), region = 36  ;;  %p206_p3 = scmp.lt.s32.totalorder (!%p175_p2), %s391_s17, 15  ;;  %v398_v9 = vld [vmem:[%s552_s2] ss:$0 sm:$0xff] (!%p175_p2) }
   0xd   : > { %s556_s17 = smov (!%p206_p3, %s391_s17), 15 }
   0xe   : > { %s392_s18 = sshll.u32 %s556_s17, 2  ;;  %s396_s29 = sshll.u32 %s556_s17, 3 }
   0xf   : > { %s494_s21 = scalar_lea.vmem %s550_s0, %s392_s18  ;;  %s499_s24 = scalar_lea.vmem %s553_s3, %s392_s18 }
  0x10   : > { %v402_v1 = vld [vmem:[%s494_s21] sm:$0xff]   ;;  %v433_v3 = vld [vmem:[%s494_s21 + $0x8] sm:$0xff]   ;;  %v434_v14 = vld [vmem:[%s494_s21 + $0x10] sm:$0xff]   ;;  %s531_s6 = scalar_lea.vmem %s554_s4, %s396_s29 }
  0x11   : > { %v418_v2 = vld [vmem:[%s499_s24] sm:$0xff]   ;;  %v403_v4 = vunpack.c.l.bf16 %v402_v1  ;;  %v404_v6 = vunpack.c.h.bf16 %v402_v1  ;;  %v436_v8 = vld [vmem:[%s499_s24 + $0x8] sm:$0xff]   ;;  %v407_v10 = vunpack.c.l.bf16 %v433_v3  ;;  %v408_v12 = vunpack.c.h.bf16 %v433_v3  ;;  %v437_v15 = vld [vmem:[%s499_s24 + $0x10] sm:$0xff]  }
  0x12   : > { %v419_v5 = vunpack.c.l.bf16 %v418_v2  ;;  %v420_v7 = vunpack.c.h.bf16 %v418_v2  ;;  %v423_v11 = vunpack.c.l.bf16 %v436_v8  ;;  %v424_v13 = vunpack.c.h.bf16 %v436_v8  ;;  %v435_v32 = vld [vmem:[%s494_s21 + $0x18] sm:$0xff]  }
  0x13   : > { %v246_v16 = vmul.f32 %v403_v4, %v504_v0  ;;  %v247_v18 = vmul.f32 %v404_v6, %v504_v0  ;;  %v248_v20 = vmul.f32 %v407_v10, %v504_v0  ;;  %v249_v22 = vmul.f32 %v408_v12, %v504_v0  ;;  %v438_v37 = vld [vmem:[%s499_s24 + $0x18] sm:$0xff]  }
  0x14   : > { %v286_v17 = vsel %vm285_vm0, %v419_v5, 0.0  ;;  %v287_v19 = vsel %vm285_vm0, %v420_v7, 0.0  ;;  %v288_v21 = vsel %vm285_vm0, %v423_v11, 0.0  ;;  %v289_v23 = vsel %vm285_vm0, %v424_v13, 0.0 }
  0x15   : > { %v261_v24 = vadd.f32 %v398_v9, %v246_v16  ;;  %v262_v25 = vadd.f32 %v398_v9, %v247_v18  ;;  %v411_v26 = vunpack.c.l.bf16 %v434_v14  ;;  %v427_v27 = vunpack.c.l.bf16 %v437_v15 }
  0x16   : > { %v263_v28 = vadd.f32 %v398_v9, %v248_v20  ;;  %v264_v29 = vadd.f32 %v398_v9, %v249_v22  ;;  %v412_v30 = vunpack.c.h.bf16 %v434_v14  ;;  %v428_v31 = vunpack.c.h.bf16 %v437_v15 }
  0x17   : > { %v294_v33 = vadd.f32 %v286_v17, %v261_v24  ;;  %v295_v34 = vadd.f32 %v287_v19, %v262_v25  ;;  %v250_v35 = vmul.f32 %v411_v26, %v504_v0  ;;  %v290_v36 = vsel %vm285_vm0, %v427_v27, 0.0 }
  0x18   : > { %v296_v38 = vadd.f32 %v288_v21, %v263_v28  ;;  %v297_v39 = vadd.f32 %v289_v23, %v264_v29  ;;  %v251_v40 = vmul.f32 %v412_v30, %v504_v0  ;;  %v291_v41 = vsel %vm285_vm0, %v428_v31, 0.0 }
  0x19   : > { %v302_v42 = vmax.f32 %v294_v33, 0.0  ;;  %v303_v43 = vmax.f32 %v295_v34, 0.0  ;;  %v265_v44 = vadd.f32 %v398_v9, %v250_v35  ;;  %v415_v45 = vunpack.c.l.bf16 %v435_v32 }
  0x1a   : > { %v304_v46 = vmax.f32 %v296_v38, 0.0  ;;  %v305_v47 = vmax.f32 %v297_v39, 0.0  ;;  %v266_v48 = vadd.f32 %v398_v9, %v251_v40  ;;  %v431_v49 = vunpack.c.l.bf16 %v438_v37 }
  0x1b   : > { %310 = vst [vmem:[%s531_s6] sm:$0xff] %v302_v42  ;;  %311 = vst [vmem:[%s531_s6 + $0x8] sm:$0xff] %v303_v43  ;;  %v298_v50 = vadd.f32 %v290_v36, %v265_v44  ;;  %v252_v51 = vmul.f32 %v415_v45, %v504_v0  ;;  %v416_v52 = vunpack.c.h.bf16 %v435_v32  ;;  %v432_v53 = vunpack.c.h.bf16 %v438_v37 }
  0x1c   : > { %312 = vst [vmem:[%s531_s6 + $0x10] sm:$0xff] %v304_v46  ;;  %313 = vst [vmem:[%s531_s6 + $0x18] sm:$0xff] %v305_v47  ;;  %v299_v54 = vadd.f32 %v291_v41, %v266_v48  ;;  %v292_v55 = vsel %vm285_vm0, %v431_v49, 0.0 }
  0x1d   : > { %v306_v56 = vmax.f32 %v298_v50, 0.0  ;;  %v267_v57 = vadd.f32 %v398_v9, %v252_v51  ;;  %v253_v58 = vmul.f32 %v416_v52, %v504_v0  ;;  %v293_v60 = vsel %vm285_vm0, %v432_v53, 0.0 }
  0x1e   : > { %v307_v59 = vmax.f32 %v299_v54, 0.0 }
  0x1f   : > { %314 = vst [vmem:[%s531_s6 + $0x20] sm:$0xff] %v306_v56  ;;  %v300_v61 = vadd.f32 %v292_v55, %v267_v57  ;;  %v268_v62 = vadd.f32 %v398_v9, %v253_v58 }
  0x20   : > { %315 = vst [vmem:[%s531_s6 + $0x28] sm:$0xff] %v307_v59 }
  0x21   : > { %v308_v63 = vmax.f32 %v300_v61, 0.0  ;;  %v301_v1 = vadd.f32 %v293_v60, %v268_v62 }
  0x23   : > { %316 = vst [vmem:[%s531_s6 + $0x30] sm:$0xff] %v308_v63  ;;  %v309_v2 = vmax.f32 %v301_v1, 0.0 }
  0x25   : > { %317 = vst [vmem:[%s531_s6 + $0x38] sm:$0xff] %v309_v2 }
  0x26 PF: > { %s14_s15 = sadd.s32 1, %s453_s15  }
  0x27   : > { %p11_p4 = scmp.ge.s32.totalorder %s14_s15, 4  }
  0x29   :  { %13 = sbr.rel (!%p11_p4) target bundleno = 1 (0x1), region = 69 }

// kernel: a_call__.5
= control target key start
LH: loop header
LB: loop body
LE: loop exit
PB: predicated region body
PF: predicated region fallthrough
CT: control target
= control target key end

     0   :  { %s3175_s12 = smov 0   ;;  %s3748_s0 = inlined_call_operand.vmem [shape: bf16[2,10,10,128], index: 0, kind: input, shape index: {}]   ;;  %s3749_s1 = inlined_call_operand.vmem [shape: bf16[9,128,128], index: 1, kind: input, shape index: {}]   ;;  %s3750_s2 = inlined_call_operand.vmem [shape: bf16[2,8,8,128], index: 2, kind: output, shape index: {0}]   ;;  %s3751_s3 = inlined_call_operand.vmem [shape: f32[2,2,128], index: 3, kind: output, shape index: {1}]  }
   0x1 LB: > { %s2291_s13 = sadd.s32 4294967295, %s3153_s12   ;;  %p2295_p0 = scmp.ge.s32.totalorder %s3153_s12, 1  ;;  %s3153_s12 = sphi %s3175_s12, %s14_s12  }
   0x2   : > { %p140_p1 = scmp.lt.s32.totalorder %s3153_s12, 3 }
   0x4   : > { %p141_p2 = pnand %p2295_p0, %p140_p1 }
   0x5   : > { %v3063_v0 = vld [vmem:[%s3749_s1 + $0x40] sm:$0xff] (!%p141_p2)   ;;  %p168_p3 = scmp.lt.s32.totalorder (!%p141_p2), %s2291_s13, 1  ;;  %v3065_v2 = vld [vmem:[%s3749_s1 + $0x48] sm:$0xff] (!%p141_p2)   ;;  %v3067_v4 = vld [vmem:[%s3749_s1 + $0x50] sm:$0xff] (!%p141_p2)   ;;  %vm215_vm0 = vsmask.f32 (!%p141_p2), 3328 }
   0x6   : > { %144 = sbr.rel (%p141_p2) target bundleno = 419 (0x1a3), region = 28  ;;  %v3064_v1 = vld [vmem:[%s3749_s1 + $0x100] sm:$0xff] (!%p141_p2)   ;;  %2758 = vmatprep.subr.bf16.mxu1 (!%p141_p2), %v3063_v0  ;;  %v3066_v3 = vld [vmem:[%s3749_s1 + $0x108] sm:$0xff] (!%p141_p2)   ;;  %v3068_v5 = vld [vmem:[%s3749_s1 + $0x110] sm:$0xff] (!%p141_p2)   ;;  %vm216_vm1 = vsmask.f32 (!%p141_p2), 7440 }
   0x7   : > { %2854 = vmatprep.subr.bf16.mxu0 (!%p141_p2), %v3064_v1  ;;  %2759 = vmatpush3.bf16.msra.mxu1 (!%p141_p2), %v3063_v0  ;;  %v3069_v6 = vld [vmem:[%s3749_s1 + $0x58] sm:$0xff] (!%p141_p2)   ;;  %v3071_v8 = vld [vmem:[%s3749_s1 + $0x60] sm:$0xff] (!%p141_p2)   ;;  %v3073_v10 = vld [vmem:[%s3749_s1 + $0x68] sm:$0xff] (!%p141_p2)   ;;  %vm637_vm3 = vcmask (!%p141_p2), 1042432   ;;  %vm638_vm4 = vcmask (!%p141_p2), 1046532   ;;  %vm2186_vm6 = vcmask (!%p141_p2), 1040384  }
   0x8   : > { %2855 = vmatpush3.bf16.msra.mxu0 (!%p141_p2), %v3064_v1  ;;  %2760 = vmatprep.subr.bf16.mxu1 (!%p141_p2), %v3065_v2  ;;  %v3070_v7 = vld [vmem:[%s3749_s1 + $0x118] sm:$0xff] (!%p141_p2)   ;;  %v3072_v9 = vld [vmem:[%s3749_s1 + $0x120] sm:$0xff] (!%p141_p2)   ;;  %v3074_v14 = vld [vmem:[%s3749_s1 + $0x128] sm:$0xff] (!%p141_p2)  }
   0x9   : > { %2856 = vmatprep.subr.bf16.mxu0 (!%p141_p2), %v3066_v3  ;;  %v3075_v22 = vld [vmem:[%s3749_s1 + $0x70] sm:$0xff] (!%p141_p2)   ;;  %v3077_v37 = vld [vmem:[%s3749_s1 + $0x78] sm:$0xff] (!%p141_p2)   ;;  %vm3264_vm2 = vmor (!%p141_p2), %vm215_vm0, %vm216_vm1 }
   0xa   : > { %v3076_v23 = vld [vmem:[%s3749_s1 + $0x130] sm:$0xff] (!%p141_p2)   ;;  %v3078_v47 = vld [vmem:[%s3749_s1 + $0x138] sm:$0xff] (!%p141_p2)   ;;  %v3079_v63 = vld [vmem:[%s3749_s1] sm:$0xff] (!%p141_p2)  }
   0xb   : > { %2761 = vmatpush3.bf16.msra.mxu1 (!%p141_p2), %v3065_v2  ;;  %v3296_v1 = vld [vmem:[%s3749_s1 + $0x140] sm:$0xff] (!%p141_p2)   ;;  %vm3438_vm5 = vmor (!%p141_p2), %vm637_vm3, %vm638_vm4 }
   0xc   : > { %2857 = vmatpush3.bf16.msra.mxu0 (!%p141_p2), %v3066_v3  ;;  %2762 = vmatprep.subr.bf16.mxu1 (!%p141_p2), %v3067_v4  ;;  %v3143_v38 = vld [vmem:[%s3749_s1 + $0x220] sm:$0xff] (!%p141_p2)  }
   0xd   : > { %s3757_s13 = smov (!%p168_p3, %s2291_s13), 1  ;;  %2858 = vmatprep.subr.bf16.mxu0 %v3068_v5 }
   0xe   : > { %s3054_s30 = smul.u32 80, %s3757_s13  ;;  %s2299_s20 = sshll.u32 %s3757_s13, 1 }
   0xf   : > { %2763 = vmatpush3.bf16.msra.mxu1 %v3067_v4  ;;  %s181_s23 = scalar_lea.vmem %s3751_s3, %s2299_s20 }
  0x10   : > { %2859 = vmatpush3.bf16.msra.mxu0 %v3068_v5  ;;  %2764 = vmatprep.subr.bf16.mxu1 %v3069_v6  ;;  %s3219_s10 = scalar_lea.vmem %s3748_s0, %s3054_s30 }
  0x11   : > { %2860 = vmatprep.subr.bf16.mxu0 %v3070_v7  ;;  %v3225_v11 = vld [vmem:[%s3219_s10] sm:$0xf]  ;;  %v3228_v12 = vld [vmem:[%s3219_s10 + $0x8] sm:$0xf]  ;;  %v3231_v13 = vld [vmem:[%s3219_s10 + $0x4] sm:$0x1] }
  0x12   : > { %v3237_v15 = vld [vmem:[%s3219_s10 + $0xc] sm:$0x1]  ;;  %v219_v16 = vshrl.u32 %v3225_v11, 16  ;;  %v222_v17 = vshll.u32 %v3225_v11, 16  ;;  %v228_v18 = vshll.u32 %v3231_v13, 16  ;;  %v233_v19 = vshrl.u32 %v3228_v12, 16 }
  0x13   : > { %2765 = vmatpush3.bf16.msra.mxu1 %v3069_v6  ;;  %v236_v20 = vshll.u32 %v3228_v12, 16  ;;  %v242_v21 = vshll.u32 %v3237_v15, 16  ;;  %v2412_v30 = vld [vmem:[%s3219_s10 + $0x8] sm:$0xf]  ;;  %v3253_v31 = vld [vmem:[%s3219_s10 + $0xc] sm:$0x1] }
  0x14   : > { %2861 = vmatpush3.bf16.msra.mxu0 %v3070_v7  ;;  %2766 = vmatprep.subr.bf16.mxu1 %v3071_v8  ;;  %v221_v24 = vrot.slane %v219_v16, 4  ;;  %v224_v25 = vrot.slane %v222_v17, 5  ;;  %v230_v26 = vrot.slane %v228_v18, 5  ;;  %v235_v27 = vrot.slane %v233_v19, 4  ;;  %v2414_v33 = vld [vmem:[%s3219_s10 + $0x10] sm:$0xf] }
  0x15   : > { %2862 = vmatprep.subr.bf16.mxu0 %v3072_v9  ;;  %v238_v28 = vrot.slane %v236_v20, 5  ;;  %v244_v29 = vrot.slane %v242_v21, 5  ;;  %v3257_v34 = vld [vmem:[%s3219_s10 + $0x14] sm:$0x1]  ;;  %v1014_v35 = vshrl.u32 %v2412_v30, 16  ;;  %v1017_v36 = vshll.u32 %v2412_v30, 16 }
  0x16   : > { %v225_v32 = vor.u32 %v224_v25, %v221_v24  ;;  %v1023_v40 = vshll.u32 %v3253_v31, 16  ;;  %v1028_v41 = vshrl.u32 %v2414_v33, 16  ;;  %v1031_v42 = vshll.u32 %v2414_v33, 16  ;;  %v3274_v51 = vld [vmem:[%s3219_s10 + $0x10] sm:$0xf] }
  0x17   : > { %2767 = vmatpush3.bf16.msra.mxu1 %v3071_v8  ;;  %v239_v39 = vor.u32 %v238_v28, %v235_v27  ;;  %v1016_v44 = vrot.slane %v1014_v35, 4  ;;  %v1019_v45 = vrot.slane %v1017_v36, 5  ;;  %v1037_v46 = vshll.u32 %v3257_v34, 16  ;;  %v3279_v55 = vld [vmem:[%s3219_s10 + $0x18] sm:$0xf] }
  0x18   : > { %2863 = vmatpush3.bf16.msra.mxu0 %v3072_v9  ;;  %2768 = vmatprep.subr.bf16.mxu1 %v3073_v10  ;;  %v226_v43 = vrot.slane %v225_v32, 4  ;;  %v1030_v49 = vrot.slane %v1028_v41, 4  ;;  %v1033_v50 = vrot.slane %v1031_v42, 5  ;;  %v1025_v54 = vrot.slane %v1023_v40, 5  ;;  %v3282_v56 = vld [vmem:[%s3219_s10 + $0x14] sm:$0x1] }
  0x19   : > { %2864 = vmatprep.subr.bf16.mxu0 %v3074_v14  ;;  %v240_v48 = vrot.slane %v239_v39, 4  ;;  %v1020_v53 = vor.u32 %v1019_v45, %v1016_v44  ;;  %v1039_v59 = vrot.slane %v1037_v46, 5  ;;  %v3287_v60 = vld [vmem:[%s3219_s10 + $0x1c] sm:$0x1]  ;;  %v247_v61 = vshrl.u32 %v3274_v51, 16 }
  0x1a   : > { %v231_v52 = vsel %vm3264_vm2, %v226_v43, %v230_v26  ;;  %v1034_v58 = vor.u32 %v1033_v50, %v1030_v49  ;;  %v250_v2 = vshll.u32 %v3274_v51, 16  ;;  %v256_v3 = vshll.u32 %v3282_v56, 16  ;;  %v2416_v8 = vld [vmem:[%s3219_s10 + $0x18] sm:$0xf]  ;;  %v3307_v16 = vld [vmem:[%s3219_s10 + $0x1c] sm:$0x1] }
  0x1b   : > { %2769 = vmatpush3.bf16.msra.mxu1 %v3073_v10  ;;  %v245_v57 = vsel %vm3264_vm2, %v240_v48, %v244_v29  ;;  %v1021_v0 = vrot.slane %v1020_v53, 4  ;;  %v249_v5 = vrot.slane %v247_v61, 4  ;;  %v261_v6 = vshrl.u32 %v3279_v55, 16  ;;  %v2418_v17 = vld [vmem:[%s3219_s10 + $0x20] sm:$0xf]  ;;  %v3081_v43 = vld [vmem:[%s3749_s1 + $0x8] sm:$0xff]  }
  0x1c   : > { %2865 = vmatpush3.bf16.msra.mxu0 %v3074_v14  ;;  %2770 = vmatprep.subr.bf16.mxu1 %v3075_v22  ;;  %v2316_v62 = vcombine.low %v231_v52, %v245_v57  ;;  %v1035_v4 = vrot.slane %v1034_v58, 4  ;;  %v264_v7 = vshll.u32 %v3279_v55, 16  ;;  %v252_v10 = vrot.slane %v250_v2, 5  ;;  %v3313_v21 = vld [vmem:[%s3219_s10 + $0x24] sm:$0x1] }
  0x1d   : > { %2866 = vmatprep.subr.bf16.mxu0 %v3076_v23  ;;  %v1026_v9 = vsel %vm3264_vm2, %v1021_v0, %v1025_v54  ;;  %v270_v14 = vshll.u32 %v3287_v60, 16  ;;  %v263_v19 = vrot.slane %v261_v6, 4  ;;  %v258_v24 = vrot.slane %v256_v3, 5  ;;  %v3082_v54 = vld [vmem:[%s3749_s1 + $0x148] sm:$0xff]   ;;  %v3343_v0 = vld [vmem:[%s3219_s10 + $0x24] sm:$0x1] }
  0x1e   : > { %2774 = vmatprep.mubr.bf16.mxu1 %v2316_v62  ;;  %v1040_v18 = vsel %vm3264_vm2, %v1035_v4, %v1039_v59  ;;  %v266_v20 = vrot.slane %v264_v7, 5  ;;  %v1042_v27 = vshrl.u32 %v2416_v8, 16  ;;  %v1045_v28 = vshll.u32 %v2416_v8, 16  ;;  %v3083_v59 = vld [vmem:[%s3749_s1 + $0x10] sm:$0xff]   ;;  %v3337_v62 = vld [vmem:[%s3219_s10 + $0x20] sm:$0xf] }
  0x1f   : > { %2771 = vmatpush3.bf16.msra.mxu1 %v3075_v22  ;;  %v2444_v22 = vcombine.low %v1026_v9, %v1040_v18  ;;  %v272_v25 = vrot.slane %v270_v14, 5  ;;  %v1051_v29 = vshll.u32 %v3307_v16, 16  ;;  %v1056_v32 = vshrl.u32 %v2418_v17, 16  ;;  %v3346_v2 = vld [vmem:[%s3219_s10 + $0x2c] sm:$0x1]  ;;  %v3084_v9 = vld [vmem:[%s3749_s1 + $0x150] sm:$0xff]  }
  0x20   : > { %2867 = vmatpush3.bf16.msra.mxu0 %v3076_v23  ;;  %2772 = vmatprep.subr.bf16.mxu1 %v3077_v37  ;;  %v253_v23 = vor.u32 %v252_v10, %v249_v5  ;;  %v267_v26 = vor.u32 %v266_v20, %v263_v19  ;;  %v1059_v33 = vshll.u32 %v2418_v17, 16  ;;  %v1065_v35 = vshll.u32 %v3313_v21, 16  ;;  %v3085_v10 = vld [vmem:[%s3749_s1 + $0x18] sm:$0xff]  }
  0x21   : > { %2868 = vmatprep.subr.bf16.mxu0 %v3078_v47  ;;  %2870 = vmatprep.mubr.bf16.mxu0 %v2444_v22  ;;  %v1047_v39 = vrot.slane %v1045_v28, 5  ;;  %v1058_v41 = vrot.slane %v1056_v32, 4  ;;  %v1053_v46 = vrot.slane %v1051_v29, 5  ;;  %v1305_v57 = vrot.slane %v3253_v31, 5  ;;  %v3086_v29 = vld [vmem:[%s3749_s1 + $0x158] sm:$0xff]  }
  0x22   : > { %v254_v30 = vrot.slane %v253_v23, 4  ;;  %v268_v36 = vrot.slane %v267_v26, 4  ;;  %v1061_v42 = vrot.slane %v1059_v33, 5  ;;  %v275_v3 = vshrl.u32 %v3337_v62, 16  ;;  %v2420_v23 = vld [vmem:[%s3219_s10 + $0x28] sm:$0xf] }
  0x23   : > { %2773 = vmatpush3.bf16.msra.mxu1 %v3077_v37  ;;  %v1044_v37 = vrot.slane %v1042_v27, 4  ;;  %v278_v4 = vshll.u32 %v3337_v62, 16  ;;  %v284_v5 = vshll.u32 %v3343_v0, 16  ;;  %v298_v8 = vshll.u32 %v3346_v2, 16  ;;  %v3367_v26 = vld [vmem:[%s3219_s10 + $0x34] sm:$0x1] }
  0x24   : > { %2869 = vmatpush3.bf16.msra.mxu0 %v3078_v47  ;;  %2782 = vmatprep.subr.bf16.mxu1 %v3079_v63  ;;  %v259_v40 = vsel %vm3264_vm2, %v254_v30, %v258_v24  ;;  %v273_v44 = vsel %vm3264_vm2, %v268_v36, %v272_v25  ;;  %v1067_v47 = vrot.slane %v1065_v35, 5  ;;  %v1062_v49 = vor.u32 %v1061_v42, %v1058_v41  ;;  %v3363_v24 = vld [vmem:[%s3219_s10 + $0x2c] sm:$0x1]  ;;  %v2422_v25 = vld [vmem:[%s3219_s10 + $0x30] sm:$0xf]  ;;  %v3087_v30 = vld [vmem:[%s3749_s1 + $0x20] sm:$0xff]  }
  0x25   : > { %2878 = vmatprep.subr.bf16.mxu0 %v3296_v1  ;;  %v1048_v45 = vor.u32 %v1047_v39, %v1044_v37  ;;  %v2317_v48 = vcombine.low %v259_v40, %v273_v44  ;;  %v277_v14 = vrot.slane %v275_v3, 4  ;;  %v280_v17 = vrot.slane %v278_v4, 5 }
  0x26   : > { %v1063_v52 = vrot.slane %v1062_v49, 4  ;;  %v286_v18 = vrot.slane %v284_v5, 5  ;;  %v300_v22 = vrot.slane %v298_v8, 5  ;;  %v1070_v27 = vshrl.u32 %v2420_v23, 16  ;;  %v2424_v5 = vld [vmem:[%s3219_s10 + $0x38] sm:$0xf] }
  0x27   : > { %v1049_v50 = vrot.slane %v1048_v45, 4  ;;  %2775 = vmatmul.mubr.bf16.vlgmr.msra.gmra.mrb[0].mxu1 %v2317_v48  ;;  %v1073_v28 = vshll.u32 %v2420_v23, 16  ;;  %v1079_v33 = vshll.u32 %v3363_v24, 16  ;;  %v1084_v35 = vshrl.u32 %v2422_v25, 16 }
  0x28   : > { %2783 = vmatpush3.bf16.msra.mxu1 %v3079_v63  ;;  %v1068_v58 = vsel %vm3264_vm2, %v1063_v52, %v1067_v47  ;;  %v3340_v63 = vld [vmem:[%s3219_s10 + $0x28] sm:$0xf]  ;;  %v1087_v36 = vshll.u32 %v2422_v25, 16  ;;  %v1072_v39 = vrot.slane %v1070_v27, 4  ;;  %v1093_v41 = vshll.u32 %v3367_v26, 16 }
  0x29   : > { %v1054_v53 = vsel %vm3264_vm2, %v1049_v50, %v1053_v46  ;;  %2784 = vmatprep.subr.bf16.mxu1 %v3081_v43  ;;  %v289_v6 = vshrl.u32 %v3340_v63, 16  ;;  %v292_v7 = vshll.u32 %v3340_v63, 16  ;;  %v1075_v40 = vrot.slane %v1073_v28, 5  ;;  %v3378_v46 = vld [vmem:[%s3219_s10 + $0x30] sm:$0xf] }
  0x2a   : > { %v2445_v61 = vcombine.low %v1054_v53, %v1068_v58  ;;  %v1086_v44 = vrot.slane %v1084_v35, 4  ;;  %v1089_v45 = vrot.slane %v1087_v36, 5  ;;  %v1095_v49 = vrot.slane %v1093_v41, 5  ;;  %v3383_v50 = vld [vmem:[%s3219_s10 + $0x38] sm:$0xf] }
  0x2b   : > { %v291_v19 = vrot.slane %v289_v6, 4  ;;  %v294_v20 = vrot.slane %v292_v7, 5  ;;  %v1076_v48 = vor.u32 %v1075_v40, %v1072_v39  ;;  %v3386_v52 = vld [vmem:[%s3219_s10 + $0x34] sm:$0x1]  ;;  %v303_v53 = vshrl.u32 %v3378_v46, 16  ;;  %v3089_v6 = vld [vmem:[%s3749_s1 + $0x28] sm:$0xff]  }
  0x2c   : > { %2871 = vmatmul.mubr.bf16.vlgmr.msra.gmra.mrb[0].mxu0 %v2445_v61  ;;  %2785 = vmatpush3.bf16.msra.mxu1 %v3081_v43  ;;  %v1081_v43 = vrot.slane %v1079_v33, 5  ;;  %v3395_v61 = vld [vmem:[%s3219_s10 + $0x3c] sm:$0x1]  ;;  %v306_v3 = vshll.u32 %v3378_v46, 16  ;;  %v312_v4 = vshll.u32 %v3386_v52, 16  ;;  %v1098_v28 = vshrl.u32 %v2424_v5, 16 }
  0x2d   : > { %2879 = vmatpush3.bf16.msra.mxu0 %v3296_v1  ;;  %2786 = vmatprep.subr.bf16.mxu1 %v3083_v59  ;;  %v281_v1 = vor.u32 %v280_v17, %v277_v14  ;;  %v295_v32 = vor.u32 %v294_v20, %v291_v19  ;;  %v1077_v8 = vrot.slane %v1076_v48, 4  ;;  %v317_v14 = vshrl.u32 %v3383_v50, 16  ;;  %v3405_v17 = vld [vmem:[%s3219_s10 + $0x3c] sm:$0x1]  ;;  %v3413_v27 = vld [vmem:[%s3219_s10 + $0x44] sm:$0x1] }
  0x2e   : > { %2880 = vmatprep.subr.bf16.mxu0 %v3082_v54  ;;  %v308_v19 = vrot.slane %v306_v3, 5  ;;  %v314_v20 = vrot.slane %v312_v4, 5  ;;  %v326_v25 = vshll.u32 %v3395_v61, 16  ;;  %v1101_v36 = vshll.u32 %v2424_v5, 16 }
  0x2f   : > { %v282_v37 = vrot.slane %v281_v1, 4  ;;  %v296_v42 = vrot.slane %v295_v32, 4  ;;  %v1082_v23 = vsel %vm3264_vm2, %v1077_v8, %v1081_v43  ;;  %v319_v1 = vrot.slane %v317_v14, 4 }
  0x30   : > { %2787 = vmatpush3.bf16.msra.mxu1 %v3083_v59  ;;  %v1090_v59 = vor.u32 %v1089_v45, %v1086_v44  ;;  %v328_v40 = vrot.slane %v326_v25, 5  ;;  %v1100_v41 = vrot.slane %v1098_v28, 4  ;;  %v1103_v45 = vrot.slane %v1101_v36, 5  ;;  %v2458_v25 = vld [vmem:[%s3219_s10 + $0x18] sm:$0xe] }
  0x31   : > { %2881 = vmatpush3.bf16.msra.mxu0 %v3082_v54  ;;  %2788 = vmatprep.subr.bf16.mxu1 %v3085_v10  ;;  %v287_v47 = vsel %vm3264_vm2, %v282_v37, %v286_v18  ;;  %v3088_v54 = vld [vmem:[%s3749_s1 + $0x160] sm:$0xff]   ;;  %v301_v58 = vsel %vm3264_vm2, %v296_v42, %v300_v22  ;;  %v320_v22 = vshll.u32 %v3383_v50, 16  ;;  %v3091_v37 = vld [vmem:[%s3749_s1 + $0x30] sm:$0xff]   ;;  %v1107_v42 = vshll.u32 %v3405_v17, 16  ;;  %v3094_v28 = vld [vmem:[%s3749_s1 + $0x178] sm:$0xff]  }
  0x32   : > { %2882 = vmatprep.subr.bf16.mxu0 %v3084_v9  ;;  %v2318_v7 = vcombine.low %v287_v47, %v301_v58  ;;  %v1091_v18 = vrot.slane %v1090_v59, 4  ;;  %v1309_v47 = vrot.slane %v3257_v34, 5  ;;  %v1313_v48 = vrot.slane %v3307_v16, 5  ;;  %v3092_v58 = vld [vmem:[%s3749_s1 + $0x170] sm:$0xff]  }
  0x33   : > { %v322_v35 = vrot.slane %v320_v22, 5  ;;  %v1104_v4 = vor.u32 %v1103_v45, %v1100_v41  ;;  %v1109_v34 = vrot.slane %v1107_v42, 5  ;;  %v1317_v22 = vrot.slane %v3313_v21, 5  ;;  %v3097_v41 = vld [vmem:[%s3749_s1 + $0x180] sm:$0xff]  }
  0x34   : > { %2789 = vmatpush3.bf16.msra.mxu1 %v3085_v10  ;;  %v305_v10 = vrot.slane %v303_v53, 4  ;;  %2778 = vmatprep.mubr.bf16.mxu1 %v2318_v7  ;;  %v1096_v32 = vsel %vm3264_vm2, %v1091_v18, %v1095_v49  ;;  %v1121_v53 = vshll.u32 %v3413_v27, 16  ;;  %v2456_v7 = vld [vmem:[%s3219_s10 + $0x8] sm:$0xe]  ;;  %v2466_v36 = vrot.slane %v2458_v25, 9 }
  0x35   : > { %2883 = vmatpush3.bf16.msra.mxu0 %v3084_v9  ;;  %2790 = vmatprep.subr.bf16.mxu1 %v3087_v30  ;;  %v2426_v9 = vld [vmem:[%s3219_s10 + $0x40] sm:$0xf]  ;;  %v2446_v39 = vcombine.low %v1082_v23, %v1096_v32  ;;  %v323_v44 = vor.u32 %v322_v35, %v319_v1  ;;  %v2464_v14 = vrot.slane %v2456_v7, 9  ;;  %v1105_v18 = vrot.slane %v1104_v4, 4 }
  0x36   : > { %2884 = vmatprep.subr.bf16.mxu0 %v3086_v29  ;;  %v309_v33 = vor.u32 %v308_v19, %v305_v10  ;;  %v1115_v49 = vshll.u32 %v2426_v9, 16  ;;  %v2457_v10 = vld [vmem:[%s3219_s10 + $0x10] sm:$0xe]  ;;  %v2328_v19 = vcombine.low %v3225_v11, %v3228_v12  ;;  %v1123_v1 = vrot.slane %v1121_v53, 5  ;;  %v2459_v12 = vld [vmem:[%s3219_s10 + $0x20] sm:$0xe] }
  0x37   : > { %2874 = vmatprep.mubr.bf16.mxu0 %v2446_v39  ;;  %v324_v3 = vrot.slane %v323_v44, 4  ;;  %v1306_v32 = vsel %vm3438_vm5, %v2464_v14, %v1305_v57  ;;  %v1110_v21 = vsel %vm3264_vm2, %v1105_v18, %v1109_v34  ;;  %v3096_v35 = vld [vmem:[%s3749_s1 + $0x80] sm:$0xff]   ;;  %v1314_v42 = vsel %vm3438_vm5, %v2466_v36, %v1313_v48  ;;  %v3101_v44 = vld [vmem:[%s3749_s1 + $0x90] sm:$0xff]  }
  0x38   : > { %2791 = vmatpush3.bf16.msra.mxu1 %v3087_v30  ;;  %v3090_v30 = vld [vmem:[%s3749_s1 + $0x168] sm:$0xff]   ;;  %v310_v43 = vrot.slane %v309_v33, 4  ;;  %v1117_v16 = vrot.slane %v1115_v49, 5  ;;  %v1321_v45 = vrot.slane %v3363_v24, 5  ;;  %v1329_v53 = vrot.slane %v3405_v17, 5  ;;  %v3105_v18 = vld [vmem:[%s3749_s1 + $0xa0] sm:$0xff]  }
  0x39   : > { %2885 = vmatpush3.bf16.msra.mxu0 %v3086_v29  ;;  %2792 = vmatprep.subr.bf16.mxu1 %v3089_v6  ;;  %v1112_v29 = vshrl.u32 %v2426_v9, 16  ;;  %v1333_v24 = vrot.slane %v3413_v27, 5  ;;  %v646_v34 = vrot.slane %v3237_v15, 5  ;;  %v650_v17 = vrot.slane %v3282_v56, 5  ;;  %v614_v15 = vld [vmem:[%s3219_s10 + $0x8] sm:$0xe] }
  0x3a   : > { %2886 = vmatprep.subr.bf16.mxu0 %v3088_v54  ;;  %v315_v59 = vsel %vm3264_vm2, %v310_v43, %v314_v20  ;;  %v2465_v20 = vrot.slane %v2457_v10, 9  ;;  %v3099_v43 = vld [vmem:[%s3749_s1 + $0x88] sm:$0xff]   ;;  %v3102_v10 = vld [vmem:[%s3749_s1 + $0x190] sm:$0xff]   ;;  %v2341_v14 = vrot.slane %v614_v15, 9  ;;  %v658_v36 = vrot.slane %v3343_v0, 5  ;;  %v3115_v0 = vld [vmem:[%s3749_s1 + $0xc0] sm:$0xff]  }
  0x3b   : > { %v1114_v5 = vrot.slane %v1112_v29, 4  ;;  %v1325_v29 = vrot.slane %v3367_v26, 5  ;;  %v2331_v26 = vcombine.low %v3378_v46, %v3383_v50  ;;  %v3103_v46 = vld [vmem:[%s3749_s1 + $0x98] sm:$0xff]   ;;  %v3120_v15 = vld [vmem:[%s3749_s1 + $0x1c8] sm:$0xff]  }
  0x3c   : > { %2793 = vmatpush3.bf16.msra.mxu1 %v3089_v6  ;;  %v3093_v6 = vld [vmem:[%s3749_s1 + $0x38] sm:$0xff]   ;;  %v1310_v11 = vsel %vm3438_vm5, %v2465_v20, %v1309_v47 }
  0x3d   : > { %2887 = vmatpush3.bf16.msra.mxu0 %v3088_v54  ;;  %2794 = vmatprep.subr.bf16.mxu1 %v3091_v37  ;;  %v329_v54 = vsel %vm3264_vm2, %v324_v3, %v328_v40  ;;  %v1118_v23 = vor.u32 %v1117_v16, %v1114_v5  ;;  %v2488_v57 = vcombine.low %v1306_v32, %v1310_v11  ;;  %v613_v16 = vld [vmem:[%s3219_s10] sm:$0xe]  ;;  %v3104_v20 = vld [vmem:[%s3749_s1 + $0x198] sm:$0xff]  }
  0x3e   : > { %2888 = vmatprep.subr.bf16.mxu0 %v3090_v30  ;;  %v2319_v9 = vcombine.low %v315_v59, %v329_v54  ;;  %v2329_v40 = vcombine.low %v3274_v51, %v3279_v55  ;;  %v2330_v51 = vcombine.low %v3337_v62, %v3340_v63  ;;  %v642_v55 = vrot.slane %v3231_v13, 5  ;;  %v3100_v62 = vld [vmem:[%s3749_s1 + $0x188] sm:$0xff]   ;;  %v2461_v63 = vld [vmem:[%s3219_s10 + $0x30] sm:$0xe]  ;;  %v2463_v59 = vld [vmem:[%s3219_s10 + $0x40] sm:$0xe] }
  0x3f   : > { %v1119_v33 = vrot.slane %v1118_v23, 4  ;;  %v2460_v13 = vld [vmem:[%s3219_s10 + $0x28] sm:$0xe]  ;;  %v2469_v49 = vrot.slane %v2461_v63, 9  ;;  %v2471_v7 = vrot.slane %v2463_v59, 9  ;;  %v2340_v56 = vrot.slane %v613_v16, 9 }
  0x40   : > { %2795 = vmatpush3.bf16.msra.mxu1 %v3091_v37  ;;  %v2467_v37 = vrot.slane %v2459_v12, 9  ;;  %v2468_v48 = vrot.slane %v2460_v13, 9  ;;  %v654_v54 = vrot.slane %v3287_v60, 5  ;;  %v615_v23 = vld [vmem:[%s3219_s10 + $0x10] sm:$0xe] }
  0x41   : > { %2889 = vmatpush3.bf16.msra.mxu0 %v3090_v30  ;;  %2779 = vmatmul.mubr.bf16.gmra.mrb[4].mxu1 %v2319_v9  ;;  %v1124_v31 = vsel %vm3264_vm2, %v1119_v33, %v1123_v1  ;;  %v1326_v4 = vsel %vm3438_vm5, %v2469_v49, %v1325_v29  ;;  %v647_v9 = vsel %vm3438_vm5, %v2341_v14, %v646_v34  ;;  %v616_v60 = vld [vmem:[%s3219_s10 + $0x18] sm:$0xe]  ;;  %v2342_v25 = vrot.slane %v615_v23, 9  ;;  %v3107_v33 = vld [vmem:[%s3749_s1 + $0xa8] sm:$0xff]  }
  0x42   : > { %2890 = vmatprep.subr.bf16.mxu0 %v3092_v58  ;;  %2796 = vmatprep.subr.bf16.mxu1 %v3093_v6  ;;  %v2447_v39 = vcombine.low %v1110_v21, %v1124_v31  ;;  %v1318_v30 = vsel %vm3438_vm5, %v2467_v37, %v1317_v22  ;;  %v1322_v3 = vsel %vm3438_vm5, %v2468_v48, %v1321_v45  ;;  %v3116_v32 = vld [vmem:[%s3219_s10 + $0x10] ss:$8 sps:$4 sm:$0xff]   ;;  %v666_v29 = vrot.slane %v3386_v52, 5  ;;  %v3119_v49 = vld [vmem:[%s3749_s1 + $0xc8] sm:$0xff]  }
  0x43   : > { %2798 = vmatprep.mubr.bf16.mxu1 %v2328_v19  ;;  %v2489_v47 = vcombine.low %v1314_v42, %v1318_v30  ;;  %v2490_v27 = vcombine.low %v1322_v3, %v1326_v4  ;;  %v643_v19 = vsel %vm3438_vm5, %v2340_v56, %v642_v55  ;;  %v651_v11 = vsel %vm3438_vm5, %v2342_v25, %v650_v17  ;;  %v3110_v31 = vld [vmem:[%s3749_s1 + $0xb0] sm:$0xff]   ;;  %v3113_v37 = vld [vmem:[%s3749_s1 + $0xb8] sm:$0xff]   ;;  %v2542_v25 = vld [vmem:[%s3219_s10 + $0x28] sm:$0xf] }
  0x44   : > { %2797 = vmatpush3.bf16.msra.mxu1 %v3093_v6  ;;  %2875 = vmatmul.mubr.bf16.gmra.mrb[4].mxu0 %v2447_v39  ;;  %v1334_v6 = vsel %vm3438_vm5, %v2471_v7, %v1333_v24  ;;  %v2364_v1 = vcombine.low %v643_v19, %v647_v9  ;;  %v617_v39 = vld [vmem:[%s3219_s10 + $0x20] sm:$0xe]  ;;  %v3114_v45 = vld [vmem:[%s3749_s1 + $0x1b8] sm:$0xff]   ;;  %v3577_v24 = vld [vmem:[%s3219_s10 + $0x14] sm:$0x1] }
  0x45   : > { %2891 = vmatpush3.bf16.msra.mxu0 %v3092_v58  ;;  %2806 = vmatprep.subr.bf16.mxu1 %v3096_v35  ;;  %v2462_v58 = vld [vmem:[%s3219_s10 + $0x38] sm:$0xe]  ;;  %v2344_v42 = vrot.slane %v617_v39, 9  ;;  %v1686_v59 = vshll.u32 %v3577_v24, 16  ;;  %v3118_v7 = vld [vmem:[%s3219_s10 + $0x20] ss:$8 sps:$4 sm:$0xff]  }
  0x46   : > { %2892 = vmatprep.subr.bf16.mxu0 %v3094_v28  ;;  %2894 = vmatprep.mubr.bf16.mxu0 %v2488_v57  ;;  %v2470_v5 = vrot.slane %v2462_v58, 9  ;;  %v3108_v57 = vld [vmem:[%s3749_s1 + $0x1a8] sm:$0xff]   ;;  %v2538_v52 = vld [vmem:[%s3219_s10 + $0x18] sm:$0xf]  ;;  %v3122_v9 = vld [vmem:[%s3749_s1 + $0x1d0] sm:$0xff]  }
  0x47   : > { %v1691_v3 = vshrl.u32 %v2538_v52, 16  ;;  %v1694_v4 = vshll.u32 %v2538_v52, 16  ;;  %v3129_v56 = vld [vmem:[%s3219_s10 + $0x30] ss:$8 sps:$4 sm:$0xff]   ;;  %v3128_v52 = vld [vmem:[%s3749_s1 + $0x1e8] sm:$0xff]  }
  0x48   : > { %v1330_v50 = vsel %vm3438_vm5, %v2470_v5, %v1329_v53  ;;  %v2536_v53 = vld [vmem:[%s3219_s10 + $0x10] sm:$0xf]  ;;  %v3123_v23 = vld [vmem:[%s3749_s1 + $0xd8] sm:$0xff]  }
  0x49   : > { %2893 = vmatpush3.bf16.msra.mxu0 %v3094_v28  ;;  %2799 = vmatmul.mubr.bf16.vlgmr.msra.gmra.mrb[0].mxu1 %v2329_v40  ;;  %v2491_v22 = vcombine.low %v1330_v50, %v1334_v6  ;;  %v2343_v28 = vrot.slane %v616_v60, 9  ;;  %v618_v40 = vld [vmem:[%s3219_s10 + $0x28] sm:$0xe]  ;;  %v1680_v58 = vshll.u32 %v2536_v53, 16  ;;  %v1693_v50 = vrot.slane %v1691_v3, 4 }
  0x4a   : > { %2902 = vmatprep.subr.bf16.mxu0 %v3097_v41  ;;  %2807 = vmatpush3.bf16.msra.mxu1 %v3096_v35  ;;  %v3106_v35 = vld [vmem:[%s3749_s1 + $0x1a0] sm:$0xff]   ;;  %v2345_v30 = vrot.slane %v618_v40, 9  ;;  %v1696_v6 = vrot.slane %v1694_v4, 5 }
  0x4b   : > { %2808 = vmatprep.subr.bf16.mxu1 %v3099_v43  ;;  %2802 = vmatprep.mubr.bf16.mxu1 %v2330_v51  ;;  %v655_v12 = vsel %vm3438_vm5, %v2343_v28, %v654_v54  ;;  %v619_v51 = vld [vmem:[%s3219_s10 + $0x30] sm:$0xe]  ;;  %v1682_v16 = vrot.slane %v1680_v58, 5  ;;  %v1688_v54 = vrot.slane %v1686_v59, 5 }
  0x4c   : > { %2895 = vmatmul.mubr.bf16.vlgmr.msra.gmra.mrb[0].mxu0 %v2489_v47  ;;  %v2365_v21 = vcombine.low %v651_v11, %v655_v12  ;;  %v670_v47 = vrot.slane %v3395_v61, 5  ;;  %v2346_v63 = vrot.slane %v619_v51, 9  ;;  %v3581_v61 = vld [vmem:[%s3219_s10 + $0x1c] sm:$0x1]  ;;  %v3131_v11 = vld [vmem:[%s3219_s10 + $0x40] ss:$8 sps:$4 sm:$0xff]  }
  0x4d   : > { %2903 = vmatpush3.bf16.msra.mxu0 %v3097_v41  ;;  %2898 = vmatprep.mubr.bf16.mxu0 %v2490_v27  ;;  %v662_v41 = vrot.slane %v3346_v2, 5  ;;  %v659_v2 = vsel %vm3438_vm5, %v2344_v42, %v658_v36  ;;  %v1700_v5 = vshll.u32 %v3581_v61, 16  ;;  %v2544_v12 = vld [vmem:[%s3219_s10 + $0x30] sm:$0xf]  ;;  %v1722_v36 = vshll.u32 %v2542_v25, 16 }
  0x4e   : > { %2809 = vmatpush3.bf16.msra.mxu1 %v3099_v43  ;;  %2904 = vmatprep.subr.bf16.mxu0 %v3100_v62  ;;  %v3111_v43 = vld [vmem:[%s3749_s1 + $0x1b0] sm:$0xff]   ;;  %v667_v34 = vsel %vm3438_vm5, %v2346_v63, %v666_v29  ;;  %v1733_v40 = vshrl.u32 %v2544_v12, 16  ;;  %v3626_v51 = vld [vmem:[%s3219_s10 + $0x24] sm:$0x1] }
  0x4f   : > { %2810 = vmatprep.subr.bf16.mxu1 %v3101_v44  ;;  %v663_v55 = vsel %vm3438_vm5, %v2345_v30, %v662_v41  ;;  %v1702_v19 = vrot.slane %v1700_v5, 5  ;;  %v1736_v41 = vshll.u32 %v2544_v12, 16  ;;  %v1724_v29 = vrot.slane %v1722_v36, 5  ;;  %v2550_v5 = vld [vmem:[%s3219_s10 + $0x48] sm:$0xf]  ;;  %v3134_v12 = vld [vmem:[%s3749_s1 + $0x1f8] sm:$0xff]  }
  0x50   : > { %v2366_v13 = vcombine.low %v659_v2, %v663_v55  ;;  %v3629_v2 = vld [vmem:[%s3219_s10 + $0x2c] sm:$0x1]  ;;  %v1714_v58 = vshll.u32 %v3626_v51, 16 }
  0x51   : > { %2803 = vmatmul.mubr.bf16.gmra.mrb[4].mxu1 %v2331_v26  ;;  %2905 = vmatpush3.bf16.msra.mxu0 %v3100_v62  ;;  %v3117_v62 = vld [vmem:[%s3749_s1 + $0x1c0] sm:$0xff]   ;;  %v1677_v26 = vshrl.u32 %v2536_v53, 16  ;;  %v1738_v63 = vrot.slane %v1736_v41, 5  ;;  %v1728_v59 = vshll.u32 %v3629_v2, 16 }
  0x52   : > { %2811 = vmatpush3.bf16.msra.mxu1 %v3101_v44  ;;  %2906 = vmatprep.subr.bf16.mxu0 %v3102_v10  ;;  %v620_v44 = vld [vmem:[%s3219_s10 + $0x38] sm:$0xe]  ;;  %v2548_v53 = vld [vmem:[%s3219_s10 + $0x40] sm:$0xf] }
  0x53   : > { %2812 = vmatprep.subr.bf16.mxu1 %v3103_v46  ;;  %2822 = vmatprep.mubr.bf16.mxu1 %v2364_v1  ;;  %v2347_v48 = vrot.slane %v620_v44, 9  ;;  %v1679_v27 = vrot.slane %v1677_v26, 4  ;;  %v2540_v1 = vld [vmem:[%s3219_s10 + $0x20] sm:$0xf]  ;;  %v3130_v26 = vld [vmem:[%s3749_s1 + $0xf0] sm:$0xff]  }
  0x54   : > { %2899 = vmatmul.mubr.bf16.gmra.mrb[4].mxu0 %v2491_v22 }
  0x55   : > { %2907 = vmatpush3.bf16.msra.mxu0 %v3102_v10  ;;  %2918 = vmatprep.mubr.bf16.mxu0 %v3116_v32  ;;  %v671_v17 = vsel %vm3438_vm5, %v2347_v48, %v670_v47  ;;  %v1683_v10 = vor.u32 %v1682_v16, %v1679_v27  ;;  %v3632_v47 = vld [vmem:[%s3219_s10 + $0x34] sm:$0x1]  ;;  %v1764_v27 = vshll.u32 %v2548_v53, 16 }
  0x56   : > { %2813 = vmatpush3.bf16.msra.mxu1 %v3103_v46  ;;  %2908 = vmatprep.subr.bf16.mxu0 %v3104_v20  ;;  %v3121_v46 = vld [vmem:[%s3749_s1 + $0xd0] sm:$0xff]   ;;  %v2367_v14 = vcombine.low %v667_v34, %v671_v17  ;;  %v1742_v3 = vshll.u32 %v3632_v47, 16  ;;  %v1761_v17 = vshrl.u32 %v2548_v53, 16  ;;  %v2581_v53 = vld [vmem:[%s3219_s10 + $0x18] sm:$0xe] }
  0x57   : > { %2814 = vmatprep.subr.bf16.mxu1 %v3105_v18  ;;  %v1684_v22 = vrot.slane %v1683_v10, 4 }
  0x59   : > { %2909 = vmatpush3.bf16.msra.mxu0 %v3104_v20  ;;  %v3135_v20 = vld [vmem:[%s3219_s10 + $0x8] ss:$8 sps:$4 sm:$0xff]   ;;  %v1689_v28 = vsel %vm3264_vm2, %v1684_v22, %v1688_v54 }
  0x5a   : > { %2815 = vmatpush3.bf16.msra.mxu1 %v3105_v18  ;;  %2910 = vmatprep.subr.bf16.mxu0 %v3106_v35  ;;  %v1697_v18 = vor.u32 %v1696_v6, %v1693_v50  ;;  %v1775_v50 = vshrl.u32 %v2550_v5, 16  ;;  %v1778_v6 = vshll.u32 %v2550_v5, 16  ;;  %v2589_v5 = vrot.slane %v2581_v53, 9 }
  0x5b   : > { %2816 = vmatprep.subr.bf16.mxu1 %v3107_v33 }
  0x5c   : > { %v1698_v60 = vrot.slane %v1697_v18, 4  ;;  %v1730_v18 = vrot.slane %v1728_v59, 5  ;;  %v3140_v59 = vld [vmem:[%s3219_s10 + $0x38] ss:$8 sps:$4 sm:$0xff]  }
  0x5d   : > { %2911 = vmatpush3.bf16.msra.mxu0 %v3106_v35  ;;  %v1705_v35 = vshrl.u32 %v2540_v1, 16 }
  0x5e   : > { %2817 = vmatpush3.bf16.msra.mxu1 %v3107_v33  ;;  %2912 = vmatprep.subr.bf16.mxu0 %v3108_v57  ;;  %v1703_v32 = vsel %vm3264_vm2, %v1698_v60, %v1702_v19  ;;  %v3125_v33 = vld [vmem:[%s3749_s1 + $0xe0] sm:$0xff]   ;;  %v3659_v60 = vld [vmem:[%s3219_s10 + $0x4c] sm:$0x1] }
  0x5f   : > { %2818 = vmatprep.subr.bf16.mxu1 %v3110_v31  ;;  %v2568_v39 = vcombine.low %v1689_v28, %v1703_v32  ;;  %v1707_v55 = vrot.slane %v1705_v35, 4  ;;  %v1777_v28 = vrot.slane %v1775_v50, 4  ;;  %v1780_v32 = vrot.slane %v1778_v6, 5  ;;  %v3136_v35 = vld [vmem:[%s3219_s10 + $0x18] ss:$8 sps:$4 sm:$0xff]   ;;  %v3144_v6 = vld [vmem:[%s3749_s1 + $0x228] sm:$0xff]  }
  0x61   : > { %2913 = vmatpush3.bf16.msra.mxu0 %v3108_v57  ;;  %v1719_v57 = vshrl.u32 %v2542_v25, 16  ;;  %v1766_v25 = vrot.slane %v1764_v27, 5 }
  0x62   : > { %2819 = vmatpush3.bf16.msra.mxu1 %v3110_v31  ;;  %2914 = vmatprep.subr.bf16.mxu0 %v3111_v43  ;;  %v1708_v31 = vshll.u32 %v2540_v1, 16  ;;  %v1763_v1 = vrot.slane %v1761_v17, 4 }
  0x63   : > { %2820 = vmatprep.subr.bf16.mxu1 %v3113_v37 }
  0x64   : > { %v1710_v44 = vrot.slane %v1708_v31, 5 }
  0x65   : > { %2915 = vmatpush3.bf16.msra.mxu0 %v3111_v43  ;;  %v3126_v43 = vld [vmem:[%s3749_s1 + $0x1e0] sm:$0xff]  }
  0x66   : > { %2821 = vmatpush3.bf16.msra.mxu1 %v3113_v37  ;;  %2916 = vmatprep.subr.bf16.mxu0 %v3114_v45  ;;  %v3124_v37 = vld [vmem:[%s3749_s1 + $0x1d8] sm:$0xff]  }
  0x67   : > { %2830 = vmatprep.subr.bf16.mxu1 %v3115_v0 }
  0x69   : > { %2823 = vmatmul.mubr.bf16.vlgmr.msra.gmra.mrb[0].mxu1 %v2365_v21  ;;  %2917 = vmatpush3.bf16.msra.mxu0 %v3114_v45  ;;  %v2546_v21 = vld [vmem:[%s3219_s10 + $0x38] sm:$0xf]  ;;  %v1721_v45 = vrot.slane %v1719_v57, 4 }
  0x6a   : > { %2831 = vmatpush3.bf16.msra.mxu1 %v3115_v0  ;;  %2826 = vmatprep.mubr.bf16.mxu1 %v2366_v13  ;;  %v1747_v42 = vshrl.u32 %v2546_v21, 16  ;;  %v1750_v30 = vshll.u32 %v2546_v21, 16  ;;  %v3127_v0 = vld [vmem:[%s3749_s1 + $0xe8] sm:$0xff]   ;;  %v1735_v13 = vrot.slane %v1733_v40, 4  ;;  %v2584_v21 = vld [vmem:[%s3219_s10 + $0x30] sm:$0xe] }
  0x6b   : > { %2832 = vmatprep.subr.bf16.mxu1 %v3119_v49  ;;  %2926 = vmatprep.subr.bf16.mxu0 %v3117_v62  ;;  %v1725_v34 = vor.u32 %v1724_v29, %v1721_v45 }
  0x6c   : > { %2919 = vmatmul.mubr.bf16.vlgmr.msra.gmra.mrb[0].mxu0 %v3118_v7  ;;  %v1749_v48 = vrot.slane %v1747_v42, 4  ;;  %v1711_v7 = vor.u32 %v1710_v44, %v1707_v55  ;;  %v1739_v16 = vor.u32 %v1738_v63, %v1735_v13  ;;  %v1767_v42 = vor.u32 %v1766_v25, %v1763_v1 }
  0x6d   : > { %2927 = vmatpush3.bf16.msra.mxu0 %v3117_v62  ;;  %2922 = vmatprep.mubr.bf16.mxu0 %v3129_v56  ;;  %v3635_v62 = vld [vmem:[%s3219_s10 + $0x3c] sm:$0x1]  ;;  %v3132_v56 = vld [vmem:[%s3749_s1 + $0x1f0] sm:$0xff]   ;;  %v1726_v54 = vrot.slane %v1725_v34, 4  ;;  %v1984_v55 = vrot.slane %v3632_v47, 5  ;;  %v1976_v25 = vrot.slane %v3626_v51, 5 }
  0x6e   : > { %2833 = vmatpush3.bf16.msra.mxu1 %v3119_v49  ;;  %2928 = vmatprep.subr.bf16.mxu0 %v3120_v15  ;;  %v1752_v49 = vrot.slane %v1750_v30, 5  ;;  %v1756_v4 = vshll.u32 %v3635_v62, 16  ;;  %v1712_v10 = vrot.slane %v1711_v7, 4  ;;  %v1740_v19 = vrot.slane %v1739_v16, 4  ;;  %v3142_v16 = vld [vmem:[%s3749_s1 + $0x218] sm:$0xff]  }
  0x6f   : > { %2834 = vmatprep.subr.bf16.mxu1 %v3121_v46  ;;  %v1731_v57 = vsel %vm3264_vm2, %v1726_v54, %v1730_v18  ;;  %v1781_v30 = vor.u32 %v1780_v32, %v1777_v28  ;;  %v1988_v45 = vrot.slane %v3635_v62, 5  ;;  %v1972_v7 = vrot.slane %v3581_v61, 5 }
  0x70   : > { %v1996_v54 = vrot.slane %v3659_v60, 5  ;;  %v1980_v32 = vrot.slane %v3629_v2, 5 }
  0x71   : > { %2827 = vmatmul.mubr.bf16.gmra.mrb[4].mxu1 %v2367_v14  ;;  %2929 = vmatpush3.bf16.msra.mxu0 %v3120_v15  ;;  %v3133_v15 = vld [vmem:[%s3749_s1 + $0xf8] sm:$0xff]   ;;  %v1716_v14 = vrot.slane %v1714_v58, 5  ;;  %v3141_v58 = vld [vmem:[%s3749_s1 + $0x210] sm:$0xff]   ;;  %v1973_v61 = vsel %vm3438_vm5, %v2589_v5, %v1972_v7 }
  0x72   : > { %2835 = vmatpush3.bf16.msra.mxu1 %v3121_v46  ;;  %2846 = vmatprep.mubr.bf16.mxu1 %v3135_v20  ;;  %v1753_v46 = vor.u32 %v1752_v49, %v1749_v48  ;;  %v1744_v20 = vrot.slane %v1742_v3, 5  ;;  %v2580_v49 = vld [vmem:[%s3219_s10 + $0x10] sm:$0xe] }
  0x73   : > { %2836 = vmatprep.subr.bf16.mxu1 %v3123_v23  ;;  %2930 = vmatprep.subr.bf16.mxu0 %v3122_v9  ;;  %v1717_v31 = vsel %vm3264_vm2, %v1712_v10, %v1716_v14  ;;  %v2588_v3 = vrot.slane %v2580_v49, 9  ;;  %v2587_v10 = vld [vmem:[%s3219_s10 + $0x48] sm:$0xe] }
  0x74   : > { %2923 = vmatmul.mubr.bf16.gmra.mrb[4].mxu0 %v3131_v11  ;;  %v1754_v22 = vrot.slane %v1753_v46, 4  ;;  %v3137_v11 = vld [vmem:[%s3749_s1 + $0x200] sm:$0xff]   ;;  %v1745_v40 = vsel %vm3264_vm2, %v1740_v19, %v1744_v20  ;;  %v2569_v29 = vcombine.low %v1717_v31, %v1731_v57  ;;  %v2595_v19 = vrot.slane %v2587_v10, 9  ;;  %v3146_v20 = vld [vmem:[%s3749_s1 + $0x238] sm:$0xff]  }
  0x75   : > { %2931 = vmatpush3.bf16.msra.mxu0 %v3122_v9  ;;  %2942 = vmatprep.mubr.bf16.mxu0 %v2568_v39  ;;  %v1758_v9 = vrot.slane %v1756_v4, 5  ;;  %v3139_v39 = vld [vmem:[%s3219_s10 + $0x28] ss:$8 sps:$4 sm:$0xff]   ;;  %v1968_v4 = vrot.slane %v3577_v24, 5 }
  0x76   : > { %2837 = vmatpush3.bf16.msra.mxu1 %v3123_v23  ;;  %2932 = vmatprep.subr.bf16.mxu0 %v3124_v37  ;;  %v3656_v23 = vld [vmem:[%s3219_s10 + $0x44] sm:$0x1] }
  0x77   : > { %2838 = vmatprep.subr.bf16.mxu1 %v3125_v33  ;;  %v1770_v36 = vshll.u32 %v3656_v23, 16  ;;  %v1759_v41 = vsel %vm3264_vm2, %v1754_v22, %v1758_v9  ;;  %v1969_v24 = vsel %vm3438_vm5, %v2588_v3, %v1968_v4  ;;  %v1992_v14 = vrot.slane %v3656_v23, 5  ;;  %v2582_v22 = vld [vmem:[%s3219_s10 + $0x20] sm:$0xe]  ;;  %v2583_v9 = vld [vmem:[%s3219_s10 + $0x28] sm:$0xe] }
  0x78   : > { %v2570_v13 = vcombine.low %v1745_v40, %v1759_v41  ;;  %v2612_v50 = vcombine.low %v1969_v24, %v1973_v61  ;;  %v1997_v23 = vsel %vm3438_vm5, %v2595_v19, %v1996_v54  ;;  %v2591_v28 = vrot.slane %v2583_v9, 9 }
  0x79   : > { %2933 = vmatpush3.bf16.msra.mxu0 %v3124_v37  ;;  %v1784_v37 = vshll.u32 %v3659_v60, 16  ;;  %v1772_v63 = vrot.slane %v1770_v36, 5  ;;  %v2590_v60 = vrot.slane %v2582_v22, 9 }
  0x7a   : > { %2839 = vmatpush3.bf16.msra.mxu1 %v3125_v33  ;;  %2934 = vmatprep.subr.bf16.mxu0 %v3126_v43  ;;  %v2585_v33 = vld [vmem:[%s3219_s10 + $0x38] sm:$0xe] }
  0x7b   : > { %2840 = vmatprep.subr.bf16.mxu1 %v3127_v0  ;;  %v2593_v44 = vrot.slane %v2585_v33, 9  ;;  %v1786_v48 = vrot.slane %v1784_v37, 5 }
  0x7d   : > { %2935 = vmatpush3.bf16.msra.mxu0 %v3126_v43  ;;  %v3138_v43 = vld [vmem:[%s3749_s1 + $0x208] sm:$0xff]   ;;  %v1989_v62 = vsel %vm3438_vm5, %v2593_v44, %v1988_v45 }
  0x7e   : > { %2841 = vmatpush3.bf16.msra.mxu1 %v3127_v0  ;;  %2936 = vmatprep.subr.bf16.mxu0 %v3128_v52  ;;  %v2592_v0 = vrot.slane %v2584_v21, 9  ;;  %v1981_v21 = vsel %vm3438_vm5, %v2591_v28, %v1980_v32 }
  0x7f   : > { %2842 = vmatprep.subr.bf16.mxu1 %v3130_v26 }
  0x80   : > { %v1985_v47 = vsel %vm3438_vm5, %v2592_v0, %v1984_v55 }
  0x81   : > { %2937 = vmatpush3.bf16.msra.mxu0 %v3128_v52  ;;  %v1768_v52 = vrot.slane %v1767_v42, 4  ;;  %v2614_v34 = vcombine.low %v1985_v47, %v1989_v62 }
  0x82   : > { %2843 = vmatpush3.bf16.msra.mxu1 %v3130_v26  ;;  %2938 = vmatprep.subr.bf16.mxu0 %v3132_v56  ;;  %v1782_v26 = vrot.slane %v1781_v30, 4 }
  0x83   : > { %2844 = vmatprep.subr.bf16.mxu1 %v3133_v15  ;;  %v1773_v17 = vsel %vm3264_vm2, %v1768_v52, %v1772_v63 }
  0x84   : > { %v1787_v27 = vsel %vm3264_vm2, %v1782_v26, %v1786_v48 }
  0x85   : > { %2939 = vmatpush3.bf16.msra.mxu0 %v3132_v56  ;;  %v2571_v46 = vcombine.low %v1773_v17, %v1787_v27  ;;  %v2586_v56 = vld [vmem:[%s3219_s10 + $0x40] sm:$0xe]  ;;  %s2626_s10 = sshll.u32 %s3757_s13, 5 }
  0x86   : > { %2845 = vmatpush3.bf16.msra.mxu1 %v3133_v15  ;;  %2940 = vmatprep.subr.bf16.mxu0 %v3134_v12  ;;  %v3145_v15 = vld [vmem:[%s3749_s1 + $0x230] sm:$0xff]   ;;  %v2594_v18 = vrot.slane %v2586_v56, 9  ;;  %s177_s19 = scalar_lea.vmem %s3750_s2, %s2626_s10 }
  0x87   : > { %2974 = vmatprep.subr.bf16.mxu1 %v3137_v11 }
  0x88   : > { %v1993_v1 = vsel %vm3438_vm5, %v2594_v18, %v1992_v14 }
  0x89   : > { %2847 = vmatmul.mubr.bf16.vlgmr.msra.gmra.mrb[0].mxu1 %v3136_v35  ;;  %2941 = vmatpush3.bf16.msra.mxu0 %v3134_v12  ;;  %v1977_v12 = vsel %vm3438_vm5, %v2590_v60, %v1976_v25 }
  0x8a   : > { %2982 = vmatpush3.bf16.msra.mxu1 %v3137_v11  ;;  %2850 = vmatprep.mubr.bf16.mxu1 %v3139_v39  ;;  %v2613_v33 = vcombine.low %v1977_v12, %v1981_v21 }
  0x8b   : > { %2975 = vmatprep.subr.bf16.mxu1 %v3138_v43  ;;  %2950 = vmatprep.subr.bf16.mxu0 %v3137_v11 }
  0x8c   : > { %2943 = vmatmul.mubr.bf16.vlgmr.msra.gmra.mrb[0].mxu0 %v2569_v29 }
  0x8d   : > { %2951 = vmatpush3.bf16.msra.mxu0 %v3137_v11  ;;  %2946 = vmatprep.mubr.bf16.mxu0 %v2570_v13  ;;  %v2615_v11 = vcombine.low %v1993_v1, %v1997_v23 }
  0x8e   : > { %2983 = vmatpush3.bf16.msra.mxu1 %v3138_v43  ;;  %2952 = vmatprep.subr.bf16.mxu0 %v3138_v43 }
  0x8f   : > { %2976 = vmatprep.subr.bf16.mxu1 %v3141_v58 }
  0x91   : > { %2851 = vmatmul.mubr.bf16.gmra.mrb[4].mxu1 %v3140_v59  ;;  %2953 = vmatpush3.bf16.msra.mxu0 %v3138_v43 }
  0x92   : > { %2984 = vmatpush3.bf16.msra.mxu1 %v3141_v58  ;;  %2970 = vmatprep.mubr.bf16.mxu1 %v2614_v34 }
  0x93   : > { %2977 = vmatprep.subr.bf16.mxu1 %v3142_v16  ;;  %2954 = vmatprep.subr.bf16.mxu0 %v3141_v58 }
  0x94   : > { %2947 = vmatmul.mubr.bf16.gmra.mrb[4].mxu0 %v2571_v46 }
  0x95   : > { %2955 = vmatpush3.bf16.msra.mxu0 %v3141_v58  ;;  %2966 = vmatprep.mubr.bf16.mxu0 %v2612_v50 }
  0x96   : > { %2985 = vmatpush3.bf16.msra.mxu1 %v3142_v16  ;;  %2956 = vmatprep.subr.bf16.mxu0 %v3142_v16 }
  0x97   : > { %2978 = vmatprep.subr.bf16.mxu1 %v3143_v38 }
  0x99   : > { %2957 = vmatpush3.bf16.msra.mxu0 %v3142_v16 }
  0x9a   : > { %2986 = vmatpush3.bf16.msra.mxu1 %v3143_v38  ;;  %2958 = vmatprep.subr.bf16.mxu0 %v3143_v38 }
  0x9b   : > { %2979 = vmatprep.subr.bf16.mxu1 %v3144_v6 }
  0x9d   : > { %2959 = vmatpush3.bf16.msra.mxu0 %v3143_v38 }
  0x9e   : > { %2987 = vmatpush3.bf16.msra.mxu1 %v3144_v6  ;;  %2960 = vmatprep.subr.bf16.mxu0 %v3144_v6 }
  0x9f   : > { %2980 = vmatprep.subr.bf16.mxu1 %v3145_v15 }
  0xa1   : > { %2961 = vmatpush3.bf16.msra.mxu0 %v3144_v6 }
  0xa2   : > { %2988 = vmatpush3.bf16.msra.mxu1 %v3145_v15  ;;  %2962 = vmatprep.subr.bf16.mxu0 %v3145_v15 }
  0xa3   : > { %2981 = vmatprep.subr.bf16.mxu1 %v3146_v20 }
  0xa5   : > { %2963 = vmatpush3.bf16.msra.mxu0 %v3145_v15 }
  0xa6   : > { %2989 = vmatpush3.bf16.msra.mxu1 %v3146_v20  ;;  %2964 = vmatprep.subr.bf16.mxu0 %v3146_v20 }
  0xa9   : > { %2971 = vmatmul.mubr.bf16.vlgmr.msra.gmra.mrb[8].mxu1 %v2615_v11  ;;  %2965 = vmatpush3.bf16.msra.mxu0 %v3146_v20 }
  0xac   : > { %2967 = vmatmul.mubr.bf16.vlgmr.msra.gmra.mrb[0].mxu0 %v2613_v33 }
 0x15c   : > { %v2848_v35 = vpop.f32.mrb[0].mxu1 }
 0x15d   : > { %v958_v51 = vpop.f32.mrb[1].mxu1 }
 0x15e   : > { %v2849_v31 = vpop.f32.mrb[2].mxu1 }
 0x15f   : > { %v961_v57 = vpop.f32.mrb[3].mxu1 }
 0x164   : > { %v2852_v2 = vpop.f32.mrb[4].mxu1 }
 0x165   : > { %v974_v36 = vpop.f32.mrb[5].mxu1 }
 0x166   : > { %v2853_v37 = vpop.f32.mrb[6].mxu1 }
 0x167   : > { %v977_v39 = vpop.f32.mrb[7].mxu1  ;;  %v2948_v40 = vpop.f32.mrb[4].mxu0 }
 0x168   : > { %v2994_v41 = vadd.f32 %v2948_v40, %v2852_v2  ;;  %v1919_v42 = vpop.f32.mrb[5].mxu0 }
 0x169   : > { %v2996_v30 = vadd.f32 %v1919_v42, %v974_v36  ;;  %v2949_v8 = vpop.f32.mrb[6].mxu0 }
 0x16a   : > { %v2998_v43 = vadd.f32 %v2949_v8, %v2853_v37  ;;  %v1922_v0 = vpop.f32.mrb[7].mxu0 }
 0x16b   : > { %v3000_v55 = vadd.f32 %v1922_v0, %v977_v39 }
 0x17c   : > { %v2972_v44 = vpop.f32.mrb[8].mxu1 }
 0x17d   : > { %v2995_v45 = vadd.f32 %v2994_v41, %v2972_v44  ;;  %v2129_v29 = vpop.f32.mrb[9].mxu1 }
 0x17e   : > { %v2997_v13 = vadd.f32 %v2996_v30, %v2129_v29  ;;  %v2973_v63 = vpop.f32.mrb[10].mxu1 }
 0x17f   : > { %v2999_v48 = vadd.f32 %v2998_v43, %v2973_v63  ;;  %v2132_v49 = vpop.f32.mrb[11].mxu1  ;;  %v2968_v52 = vpop.f32.mrb[0].mxu0  ;;  %v2171_v20 = vmul.f32 %v2995_v45, %v2995_v45 }
 0x180   : > { %v3001_v53 = vadd.f32 %v3000_v55, %v2132_v49  ;;  %v2990_v47 = vadd.f32 %v2968_v52, %v2848_v35  ;;  %v2113_v62 = vpop.f32.mrb[1].mxu0  ;;  %v2169_v56 = vmul.f32 %v2997_v13, %v2997_v13 }
 0x181   : > { %v2645_v26 = vpack.c.bf16 %v2999_v48, %v2995_v45  ;;  %v2991_v59 = vadd.f32 %v2113_v62, %v958_v51  ;;  %v2969_v3 = vpop.f32.mrb[2].mxu0  ;;  %v2172_v1 = vmul.f32 %v2999_v48, %v2999_v48 }
 0x182   : > { %v2640_v58 = vpack.c.bf16 %v3001_v53, %v2997_v13  ;;  %v2992_v4 = vadd.f32 %v2969_v3, %v2849_v31  ;;  %v2116_v5 = vpop.f32.mrb[3].mxu0  ;;  %v2167_v61 = vmul.f32 %v2990_v47, %v2990_v47  ;;  %v2170_v18 = vmul.f32 %v3001_v53, %v3001_v53 }
 0x183   : > { %2649 = vst [vmem:[%s177_s19 + $0x18] sm:$0xff] %v2645_v26   ;;  %v2993_v7 = vadd.f32 %v2116_v5, %v961_v57  ;;  %v2165_v17 = vmul.f32 %v2991_v59, %v2991_v59 }
 0x184   : > { %2648 = vst [vmem:[%s177_s19 + $0x10] sm:$0xff] %v2640_v58   ;;  %v2635_v34 = vpack.c.bf16 %v2992_v4, %v2990_v47  ;;  %v2168_v50 = vmul.f32 %v2992_v4, %v2992_v4 }
 0x185   : > { %v2152_v27 = vadd.f32 %v2993_v7, %v2991_v59  ;;  %v2166_v16 = vmul.f32 %v2993_v7, %v2993_v7  ;;  %v2630_v24 = vpack.c.bf16 %v2993_v7, %v2991_v59 }
 0x186   : > { %2647 = vst [vmem:[%s177_s19 + $0x8] sm:$0xff] %v2635_v34  }
 0x187   : > { %v2153_v46 = vadd.f32 %v2990_v47, %v2152_v27  ;;  %v2173_v38 = vadd.f32 %v2166_v16, %v2165_v17  ;;  %2631 = vst [vmem:[%s177_s19] sm:$0xff] %v2630_v24  }
 0x189   : > { %v2174_v6 = vadd.f32 %v2173_v38, %v2167_v61  ;;  %v2154_v15 = vadd.f32 %v2992_v4, %v2153_v46 }
 0x18b   : > { %v2155_v10 = vadd.f32 %v2997_v13, %v2154_v15  ;;  %v2175_v14 = vadd.f32 %v2174_v6, %v2168_v50 }
 0x18d   : > { %v2156_v54 = vadd.f32 %v3001_v53, %v2155_v10  ;;  %v2176_v19 = vadd.f32 %v2175_v14, %v2169_v56 }
 0x18f   : > { %v2157_v22 = vadd.f32 %v2995_v45, %v2156_v54  ;;  %v2177_v9 = vadd.f32 %v2176_v19, %v2170_v18 }
 0x191   : > { %v2158_v23 = vadd.f32 %v2999_v48, %v2157_v22  ;;  %v2178_v60 = vadd.f32 %v2177_v9, %v2171_v20 }
 0x193   : > { %v2159_v25 = vrot.slane %v2158_v23, 4  ;;  %v2179_v28 = vadd.f32 %v2178_v60, %v2172_v1 }
 0x195   : > { %v2160_v32 = vadd.f32 %v2159_v25, %v2158_v23  ;;  %v2180_v11 = vrot.slane %v2179_v28, 4 }
 0x197   : > { %v2161_v12 = vrot.slane %v2160_v32, 2  ;;  %v2181_v21 = vadd.f32 %v2180_v11, %v2179_v28 }
 0x199   : > { %v2162_v33 = vadd.f32 %v2161_v12, %v2160_v32  ;;  %v2182_v35 = vrot.slane %v2181_v21, 2 }
 0x19b   : > { %v2163_v51 = vrot.slane %v2162_v33, 1  ;;  %v2183_v31 = vadd.f32 %v2182_v35, %v2181_v21 }
 0x19d   : > { %v2184_v57 = vrot.slane %v2183_v31, 1  ;;  %v2164_v2 = vadd.f32 %v2163_v51, %v2162_v33 }
 0x19f   : > { %v2185_v36 = vadd.f32 %v2184_v57, %v2183_v31 }
 0x1a1   : > { %v2187_v37 = vsel %vm2186_vm6, %v2164_v2, %v2185_v36 }
 0x1a2   : > { %2188 = vst [vmem:[%s181_s23] sm:$0x3] %v2187_v37 }
 0x1a3 PF: > { %s14_s12 = sadd.s32 1, %s3153_s12  }
 0x1a4   : > { %p11_p4 = scmp.ge.s32.totalorder %s14_s12, 4  }
 0x1a6   :  { %13 = sbr.rel (!%p11_p4) target bundleno = 1 (0x1), region = 80 }

</bundles_post_ra>
